<compile_context>
chip_gen: v6e
topology: v6e:2x2x1
jax: 0.10.0
libtpu: 0.0.40
codegen_flags: <defaults>
</compile_context>

<pallas_src>
import functools

import jax
import jax.numpy as jnp
from jax.experimental import pallas as pl
from jax.experimental.pallas import tpu as pltpu

LANE = 128  # pad hidden feature dim to a multiple of the 128-wide lane axis


def mlp_kernel(x_ref, w_in_ref, b_in_ref, w_hid_ref, b_hid_ref,
               w_out_ref, b_out_ref, o_ref, *, n_hid_layers, n_output):
    """Fused MLP forward on one batch tile. Hidden dims are 128-padded."""
    # Fold the f32 -> bf16 cast into the kernel (no wrapper-side convert op).
    x = x_ref[...].astype(w_in_ref.dtype)                                # (tb, n_in) bf16
    # Input layer + ReLU (accumulate in f32 on the MXU)
    h = jnp.dot(x, w_in_ref[...], preferred_element_type=jnp.float32)   # (tb, Hp) f32
    h = jnp.maximum(h + b_in_ref[...], 0.0)
    # Hidden layers + ReLU (statically unrolled; weights stay resident in VMEM)
    for l in range(n_hid_layers):
        h = jnp.dot(h.astype(w_hid_ref.dtype), w_hid_ref[l],
                    preferred_element_type=jnp.float32)                  # (tb, Hp) f32
        h = jnp.maximum(h + b_hid_ref[l], 0.0)
    # Output layer (no activation). MXU result is lane-padded (tb, Op); slice
    # the real columns and store at the true output width.
    out = jnp.dot(h.astype(w_out_ref.dtype), w_out_ref[...],
                  preferred_element_type=jnp.float32)                    # (tb, Op) f32
    o_ref[...] = (out[:, :n_output] + b_out_ref[...]).astype(o_ref.dtype)


def init_nn_params(key, n_input, n_output, n_hidden, n_layers):
    """Deterministic kaiming_normal_ (fan_in, relu) weights, zero biases,
    matching NN.init_weights. Weight shapes are PyTorch-style (out, in)."""
    def kaiming(k, out_f, in_f):
        std = jnp.sqrt(2.0 / in_f)
        return jax.random.normal(k, (out_f, in_f), dtype=jnp.float32) * std

    keys = jax.random.split(key, n_layers + 1)
    w_in = kaiming(keys[0], n_hidden, n_input)                 # (H, N_INPUT)
    b_in = jnp.zeros((n_hidden,), jnp.float32)
    if n_layers > 1:
        w_hid = jnp.stack([kaiming(keys[1 + i], n_hidden, n_hidden)
                           for i in range(n_layers - 1)], axis=0)  # (L-1, H, H)
    else:
        w_hid = jnp.zeros((0, n_hidden, n_hidden), jnp.float32)
    b_hid = jnp.zeros((n_layers - 1, n_hidden), jnp.float32)
    w_out = kaiming(keys[n_layers], n_output, n_hidden)        # (N_OUT, H)
    b_out = jnp.zeros((n_output,), jnp.float32)
    return w_in, b_in, w_hid, b_hid, w_out, b_out


def _round_up(n, m):
    return max(m, ((n + m - 1) // m) * m)


def prepare_params(w_in, b_in, w_hid, b_hid, w_out, b_out,
                   compute_dtype=jnp.bfloat16):
    """One-time glue (NOT on the per-call forward path):
    transpose PyTorch (out,in) weights to (in,out), zero-pad hidden dims to a
    multiple of 128 lanes, cast weights to the MXU compute dtype. Zero padding
    is exact: padded activations stay 0 through ReLU and contribute 0 to later
    contractions."""
    n_hidden, n_input = w_in.shape
    n_output = w_out.shape[0]
    n_hid_layers = w_hid.shape[0]
    Hp = _round_up(n_hidden, LANE)
    Op = _round_up(n_output, LANE)

    w_in_t = jnp.zeros((n_input, Hp), compute_dtype)
    w_in_t = w_in_t.at[:, :n_hidden].set(w_in.T.astype(compute_dtype))      # (n_in, Hp)
    b_in_p = jnp.zeros((1, Hp), jnp.float32).at[0, :n_hidden].set(b_in)      # (1, Hp)

    if n_hid_layers > 0:
        w_hid_t = jnp.zeros((n_hid_layers, Hp, Hp), compute_dtype)
        w_hid_t = w_hid_t.at[:, :n_hidden, :n_hidden].set(
            jnp.transpose(w_hid, (0, 2, 1)).astype(compute_dtype))           # (L-1, Hp, Hp)
        b_hid_p = jnp.zeros((n_hid_layers, 1, Hp), jnp.float32)
        b_hid_p = b_hid_p.at[:, 0, :n_hidden].set(b_hid)                     # (L-1, 1, Hp)
    else:
        # Minimal never-read filler (kernel loop has zero iterations); tiny so
        # the per-call DMA of this block is negligible.
        w_hid_t = jnp.zeros((1, 8, LANE), compute_dtype)
        b_hid_p = jnp.zeros((1, 1, LANE), jnp.float32)

    w_out_t = jnp.zeros((Hp, Op), compute_dtype)
    w_out_t = w_out_t.at[:n_hidden, :n_output].set(w_out.T.astype(compute_dtype))  # (Hp, Op)
    # Bias kept at true width; added after the in-kernel slice of the padded result.
    b_out_p = b_out.reshape(1, n_output).astype(jnp.float32)                 # (1, n_out)

    return w_in_t, b_in_p, w_hid_t, b_hid_p, w_out_t, b_out_p


def choose_tb(batch):
    """One grid step per TensorCore: grid=(1,) on single-TC v5e/v6e, grid=(2,)
    on dual-TC v7x so dimension_semantics=("parallel",) shards across cores."""
    n_tc = 1
    try:
        kind = jax.devices()[0].device_kind.lower()
        if "v7" in kind or "7x" in kind:
            n_tc = 2
    except Exception:
        pass
    if n_tc == 2 and batch % 2 == 0 and (batch // 2) % 8 == 0:
        return batch // 2
    return batch


@functools.partial(jax.jit, static_argnames=("n_hid_layers", "n_output", "tb"))
def nn_forward(x, w_in_t, b_in_p, w_hid_t, b_hid_p, w_out_t, b_out_p,
               *, n_hid_layers, n_output, tb):
    """Pallas fused-MLP forward. Expects prepared (padded, transposed, bf16) params."""
    B, n_input = x.shape
    Hp = w_in_t.shape[1]
    Op = w_out_t.shape[1]
    # TODO(synk): arbitrary batch sizes would need a cdiv grid + masked last tile.
    assert B % tb == 0, "batch must be divisible by the batch tile"

    grid = (B // tb,)
    flops = 2 * B * (n_input * Hp + n_hid_layers * Hp * Hp + Hp * Op)
    param_bytes = sum(int(a.size) * jnp.dtype(a.dtype).itemsize
                      for a in (w_in_t, b_in_p, w_hid_t, b_hid_p, w_out_t, b_out_p))
    bytes_accessed = (B * n_input * 4) + param_bytes * len(grid) * grid[0] // grid[0] \
                     + (B * n_output * 4)

    out = pl.pallas_call(
        functools.partial(mlp_kernel, n_hid_layers=n_hid_layers, n_output=n_output),
        out_shape=jax.ShapeDtypeStruct((B, n_output), jnp.float32),
        grid_spec=pl.GridSpec(
            grid=grid,
            in_specs=[
                pl.BlockSpec((tb, n_input), lambda i: (i, 0)),     # x: tiled on batch (f32)
                pl.BlockSpec(w_in_t.shape, lambda i: (0, 0)),      # weights resident
                pl.BlockSpec(b_in_p.shape, lambda i: (0, 0)),
                pl.BlockSpec(w_hid_t.shape, lambda i: (0, 0, 0)),
                pl.BlockSpec(b_hid_p.shape, lambda i: (0, 0, 0)),
                pl.BlockSpec(w_out_t.shape, lambda i: (0, 0)),
                pl.BlockSpec(b_out_p.shape, lambda i: (0, 0)),
            ],
            # True-width output: no padded slab, no wrapper-side slice op.
            out_specs=pl.BlockSpec((tb, n_output), lambda i: (i, 0)),
        ),
        compiler_params=pltpu.CompilerParams(
            dimension_semantics=("parallel",),
            vmem_limit_bytes=32 * 1024 * 1024),
        # TODO(synk): for large H / many layers, stream hidden weights over an
        # "arbitrary" grid axis (per-layer) instead of keeping the whole stack
        # resident — matters first on v7x (64 MiB VMEM).
        cost_estimate=pl.CostEstimate(flops=flops, transcendentals=0,
                                      bytes_accessed=int(bytes_accessed)),
    )(x, w_in_t, b_in_p, w_hid_t, b_hid_p, w_out_t, b_out_p)
    return out


def nn_forward_ref(x, w_in, b_in, w_hid, b_hid, w_out, b_out):
    """Pure-JAX f32 reference mirroring the PyTorch forward."""
    h = jnp.maximum(x @ w_in.T + b_in, 0.0)
    for l in range(w_hid.shape[0]):
        h = jnp.maximum(h @ w_hid[l].T + b_hid[l], 0.0)
    return h @ w_out.T + b_out


# TODO(synk): fit()/predict() training loop (Adam, StepLR, extra physics loss terms)
# are host-side utilities with no Pallas equivalent; only forward() is implemented.

if __name__ == "__main__":
    # NN(N_INPUT=4, N_OUTPUT=2, N_HIDDEN=32, N_LAYERS=3)
    N_INPUT, N_OUTPUT, N_HIDDEN, N_LAYERS = 4, 2, 32, 3
    BATCH = 512
    TB = choose_tb(BATCH)   # whole batch on v5e/v6e (1 TC), B/2 on v7x (2 TCs)

    key = jax.random.PRNGKey(0)
    k_params, k_x = jax.random.split(key)
    params = init_nn_params(k_params, N_INPUT, N_OUTPUT, N_HIDDEN, N_LAYERS)
    x = jax.random.normal(k_x, (BATCH, N_INPUT), dtype=jnp.float32)

    # One-time parameter preparation (transpose + pad + bf16 cast), off the hot path.
    prepped = prepare_params(*params)
    prepped = jax.block_until_ready(prepped)

    out = nn_forward(x, *prepped,
                     n_hid_layers=N_LAYERS - 1, n_output=N_OUTPUT, tb=TB)
    out = jax.block_until_ready(out)

    ref = nn_forward_ref(x, *params)
    # bf16 MXU inputs with f32 accumulation: compare against the f32 reference
    # with a tolerance covering bf16 input rounding (~1e-2 relative).
    if not jnp.allclose(out, ref, atol=5e-2, rtol=5e-2):
        max_err = float(jnp.max(jnp.abs(out - ref)))
        raise AssertionError(f"Pallas output does not match JAX reference "
                             f"(max abs err = {max_err:.4e})")

    print("KERNEL_OK")
</pallas_src>

<mosaic_0001>
module attributes {stable_mosaic.version = 11 : i64} {
  func.func @mlp_kernel(%arg0: i32, %arg1: memref<512x4xf32, #tpu.memory_space<vmem>>, %arg2: memref<4x128xbf16, #tpu.memory_space<vmem>>, %arg3: memref<1x128xf32, #tpu.memory_space<vmem>>, %arg4: memref<2x128x128xbf16, #tpu.memory_space<vmem>>, %arg5: memref<2x1x128xf32, #tpu.memory_space<vmem>>, %arg6: memref<128x128xbf16, #tpu.memory_space<vmem>>, %arg7: memref<1x2xf32, #tpu.memory_space<vmem>>, %arg8: memref<512x2xf32, #tpu.memory_space<vmem>>) attributes {dimension_semantics = [#tpu.dimension_semantics<parallel>], iteration_bounds = array<i64: 1>, scalar_prefetch = 0 : i64, scratch_operands = 0 : i64, tpu.core_type = #tpu.core_type<tc>, window_params = [{transform_indices = @transform_0, window_bounds = array<i64: 512, 4>}, {pipeline_mode = #tpu.pipeline_mode<synchronous>, transform_indices = @transform_1, window_bounds = array<i64: 4, 128>}, {pipeline_mode = #tpu.pipeline_mode<synchronous>, transform_indices = @transform_2, window_bounds = array<i64: 1, 128>}, {pipeline_mode = #tpu.pipeline_mode<synchronous>, transform_indices = @transform_3, window_bounds = array<i64: 2, 128, 128>}, {pipeline_mode = #tpu.pipeline_mode<synchronous>, transform_indices = @transform_4, window_bounds = array<i64: 2, 1, 128>}, {pipeline_mode = #tpu.pipeline_mode<synchronous>, transform_indices = @transform_5, window_bounds = array<i64: 128, 128>}, {pipeline_mode = #tpu.pipeline_mode<synchronous>, transform_indices = @transform_6, window_bounds = array<i64: 1, 2>}, {transform_indices = @transform_7, window_bounds = array<i64: 512, 2>}]} {
    %c0 = arith.constant 0 : index
    %c0_0 = arith.constant 0 : index
    %0 = vector.load %arg1[%c0, %c0_0] : memref<512x4xf32, #tpu.memory_space<vmem>>, vector<512x4xf32>
    %1 = arith.truncf %0 : vector<512x4xf32> to vector<512x4xbf16>
    %c0_1 = arith.constant 0 : index
    %c0_2 = arith.constant 0 : index
    %2 = vector.load %arg2[%c0_1, %c0_2] : memref<4x128xbf16, #tpu.memory_space<vmem>>, vector<4x128xbf16>
    %cst = arith.constant dense<0.000000e+00> : vector<512x128xf32>
    %3 = tpu.matmul %1, %2, %cst {dimension_numbers = #tpu.dot_dimension_numbers<[1], [0], [0], [1], [0, 0, 1, 1], [], []>} : vector<512x4xbf16>, vector<4x128xbf16>, vector<512x128xf32> -> vector<512x128xf32>
    %c0_3 = arith.constant 0 : index
    %c0_4 = arith.constant 0 : index
    %4 = vector.load %arg3[%c0_3, %c0_4] : memref<1x128xf32, #tpu.memory_space<vmem>>, vector<1x128xf32>
    %5 = vector.broadcast %4 : vector<1x128xf32> to vector<512x128xf32>
    %6 = arith.addf %3, %5 : vector<512x128xf32>
    %cst_5 = arith.constant 0.000000e+00 : f32
    %7 = vector.broadcast %cst_5 : f32 to vector<512x128xf32>
    %8 = arith.maximumf %6, %7 : vector<512x128xf32>
    %9 = arith.truncf %8 : vector<512x128xf32> to vector<512x128xbf16>
    %c0_6 = arith.constant 0 : index
    %c0_7 = arith.constant 0 : index
    %c0_8 = arith.constant 0 : index
    %10 = vector.load %arg4[%c0_6, %c0_7, %c0_8] : memref<2x128x128xbf16, #tpu.memory_space<vmem>>, vector<1x128x128xbf16>
    %11 = vector.shape_cast %10 : vector<1x128x128xbf16> to vector<128x128xbf16>
    %cst_9 = arith.constant dense<0.000000e+00> : vector<512x128xf32>
    %12 = tpu.matmul %9, %11, %cst_9 {dimension_numbers = #tpu.dot_dimension_numbers<[1], [0], [0], [1], [0, 0, 1, 1], [], []>} : vector<512x128xbf16>, vector<128x128xbf16>, vector<512x128xf32> -> vector<512x128xf32>
    %c0_10 = arith.constant 0 : index
    %c0_11 = arith.constant 0 : index
    %c0_12 = arith.constant 0 : index
    %13 = vector.load %arg5[%c0_10, %c0_11, %c0_12] : memref<2x1x128xf32, #tpu.memory_space<vmem>>, vector<1x1x128xf32>
    %14 = vector.shape_cast %13 : vector<1x1x128xf32> to vector<1x128xf32>
    %15 = vector.broadcast %14 : vector<1x128xf32> to vector<512x128xf32>
    %16 = arith.addf %12, %15 : vector<512x128xf32>
    %cst_13 = arith.constant 0.000000e+00 : f32
    %17 = vector.broadcast %cst_13 : f32 to vector<512x128xf32>
    %18 = arith.maximumf %16, %17 : vector<512x128xf32>
    %19 = arith.truncf %18 : vector<512x128xf32> to vector<512x128xbf16>
    %c1 = arith.constant 1 : index
    %c0_14 = arith.constant 0 : index
    %c0_15 = arith.constant 0 : index
    %20 = vector.load %arg4[%c1, %c0_14, %c0_15] : memref<2x128x128xbf16, #tpu.memory_space<vmem>>, vector<1x128x128xbf16>
    %21 = vector.shape_cast %20 : vector<1x128x128xbf16> to vector<128x128xbf16>
    %cst_16 = arith.constant dense<0.000000e+00> : vector<512x128xf32>
    %22 = tpu.matmul %19, %21, %cst_16 {dimension_numbers = #tpu.dot_dimension_numbers<[1], [0], [0], [1], [0, 0, 1, 1], [], []>} : vector<512x128xbf16>, vector<128x128xbf16>, vector<512x128xf32> -> vector<512x128xf32>
    %c1_17 = arith.constant 1 : index
    %c0_18 = arith.constant 0 : index
    %c0_19 = arith.constant 0 : index
    %23 = vector.load %arg5[%c1_17, %c0_18, %c0_19] : memref<2x1x128xf32, #tpu.memory_space<vmem>>, vector<1x1x128xf32>
    %24 = vector.shape_cast %23 : vector<1x1x128xf32> to vector<1x128xf32>
    %25 = vector.broadcast %24 : vector<1x128xf32> to vector<512x128xf32>
    %26 = arith.addf %22, %25 : vector<512x128xf32>
    %cst_20 = arith.constant 0.000000e+00 : f32
    %27 = vector.broadcast %cst_20 : f32 to vector<512x128xf32>
    %28 = arith.maximumf %26, %27 : vector<512x128xf32>
    %29 = arith.truncf %28 : vector<512x128xf32> to vector<512x128xbf16>
    %c0_21 = arith.constant 0 : index
    %c0_22 = arith.constant 0 : index
    %30 = vector.load %arg6[%c0_21, %c0_22] : memref<128x128xbf16, #tpu.memory_space<vmem>>, vector<128x128xbf16>
    %cst_23 = arith.constant dense<0.000000e+00> : vector<512x128xf32>
    %31 = tpu.matmul %29, %30, %cst_23 {dimension_numbers = #tpu.dot_dimension_numbers<[1], [0], [0], [1], [0, 0, 1, 1], [], []>} : vector<512x128xbf16>, vector<128x128xbf16>, vector<512x128xf32> -> vector<512x128xf32>
    %32 = vector.extract_strided_slice %31 {offsets = [0, 0], sizes = [512, 2], strides = [1, 1]} : vector<512x128xf32> to vector<512x2xf32>
    %c0_24 = arith.constant 0 : index
    %c0_25 = arith.constant 0 : index
    %33 = vector.load %arg7[%c0_24, %c0_25] : memref<1x2xf32, #tpu.memory_space<vmem>>, vector<1x2xf32>
    %34 = vector.broadcast %33 : vector<1x2xf32> to vector<512x2xf32>
    %35 = arith.addf %32, %34 : vector<512x2xf32>
    %c0_26 = arith.constant 0 : index
    %c0_27 = arith.constant 0 : index
    %36 = vector.load %arg8[%c0_26, %c0_27] : memref<512x2xf32, #tpu.memory_space<vmem>>, vector<512x2xf32>
    tpu.vector_store %arg8[%c0_26, %c0_27], %35 {strides = array<i32>} : memref<512x2xf32, #tpu.memory_space<vmem>>, vector<512x2xf32>,
    return
  }
  func.func @transform_0(%arg0: i32) -> (i32, i32) {
    %c0_i32 = arith.constant 0 : i32
    %c0_i32_0 = arith.constant 0 : i32
    return %arg0, %c0_i32 : i32, i32
  }
  func.func @transform_1(%arg0: i32) -> (i32, i32) {
    %c0_i32 = arith.constant 0 : i32
    %c0_i32_0 = arith.constant 0 : i32
    %c0_i32_1 = arith.constant 0 : i32
    return %c0_i32, %c0_i32_0 : i32, i32
  }
  func.func @transform_2(%arg0: i32) -> (i32, i32) {
    %c0_i32 = arith.constant 0 : i32
    %c0_i32_0 = arith.constant 0 : i32
    %c0_i32_1 = arith.constant 0 : i32
    return %c0_i32, %c0_i32_0 : i32, i32
  }
  func.func @transform_3(%arg0: i32) -> (i32, i32, i32) {
    %c0_i32 = arith.constant 0 : i32
    %c0_i32_0 = arith.constant 0 : i32
    %c0_i32_1 = arith.constant 0 : i32
    %c0_i32_2 = arith.constant 0 : i32
    return %c0_i32, %c0_i32_0, %c0_i32_1 : i32, i32, i32
  }
  func.func @transform_4(%arg0: i32) -> (i32, i32, i32) {
    %c0_i32 = arith.constant 0 : i32
    %c0_i32_0 = arith.constant 0 : i32
    %c0_i32_1 = arith.constant 0 : i32
    %c0_i32_2 = arith.constant 0 : i32
    return %c0_i32, %c0_i32_0, %c0_i32_1 : i32, i32, i32
  }
  func.func @transform_5(%arg0: i32) -> (i32, i32) {
    %c0_i32 = arith.constant 0 : i32
    %c0_i32_0 = arith.constant 0 : i32
    %c0_i32_1 = arith.constant 0 : i32
    return %c0_i32, %c0_i32_0 : i32, i32
  }
  func.func @transform_6(%arg0: i32) -> (i32, i32) {
    %c0_i32 = arith.constant 0 : i32
    %c0_i32_0 = arith.constant 0 : i32
    %c0_i32_1 = arith.constant 0 : i32
    return %c0_i32, %c0_i32_0 : i32, i32
  }
  func.func @transform_7(%arg0: i32) -> (i32, i32) {
    %c0_i32 = arith.constant 0 : i32
    %c0_i32_0 = arith.constant 0 : i32
    return %arg0, %c0_i32 : i32, i32
  }
}

</mosaic_0001>

<bundles_post_ra>
// kernel: nn_forward.1
= control target key start
LH: loop header
LB: loop body
LE: loop exit
PB: predicated region body
PF: predicated region fallthrough
CT: control target
= control target key end

     0   :  { %vm228_vm0 = vcmask 1041408   ;;  %vm131_vm1 = vcmask 31744   ;;  %vm1955_vm2 = vcmask 15360   ;;  %s3472_s1 = inlined_call_operand.vmem [shape: bf16[4,128], index: 1, kind: input, shape index: {}]   ;;  %s3473_s0 = inlined_call_operand.vmem [shape: f32[512,4], index: 0, kind: input, shape index: {}]   ;;  %s3474_s3 = inlined_call_operand.vmem [shape: bf16[2,128,128], index: 3, kind: input, shape index: {}]   ;;  %s3475_s2 = inlined_call_operand.vmem [shape: f32[1,128], index: 2, kind: input, shape index: {}]   ;;  %s3476_s5 = inlined_call_operand.vmem [shape: bf16[128,128], index: 5, kind: input, shape index: {}]   ;;  %s3477_s4 = inlined_call_operand.vmem [shape: f32[2,1,128], index: 4, kind: input, shape index: {}]   ;;  %s3478_s6 = inlined_call_operand.vmem [shape: f32[1,2], index: 6, kind: input, shape index: {}]   ;;  %s3479_s7 = inlined_call_operand.vmem [shape: f32[512,2], index: 7, kind: output, shape index: {}]  }
   0x1   :  { %v123_v0 = vld [vmem:[%s3472_s1] sm:$0x3]  ;;  %v28_v2 = vld [vmem:[%s3473_s0 + $0x8] sm:$0xff]  ;;  %v29_v5 = vld [vmem:[%s3473_s0 + $0x10] sm:$0xff] }
   0x2   :  { %v27_v1 = vld [vmem:[%s3473_s0] sm:$0xff]  ;;  %2576 = vmatprep.subr.msk.bf16.mxu0 %vm228_vm0, %v123_v0  ;;  %v230_v3 = vsel %vm228_vm0, %v123_v0, 0  ;;  %v30_v6 = vld [vmem:[%s3473_s0 + $0x18] sm:$0xff]  ;;  %v32_v9 = vld [vmem:[%s3473_s0 + $0x28] sm:$0xff] }
   0x3   :  { %v91_v4 = vpack.c.bf16 %v28_v2, %v27_v1  ;;  %v31_v7 = vld [vmem:[%s3473_s0 + $0x20] sm:$0xff]  ;;  %2255 = vmatpush3.bf16.msra.mxu0 %v230_v3  ;;  %v92_v8 = vpack.c.bf16 %v30_v6, %v29_v5  ;;  %v33_v11 = vld [vmem:[%s3473_s0 + $0x30] sm:$0xff]  ;;  %v34_v12 = vld [vmem:[%s3473_s0 + $0x38] sm:$0xff] }
   0x4   :  { %v93_v10 = vpack.c.bf16 %v32_v9, %v31_v7  ;;  %v35_v13 = vld [vmem:[%s3473_s0 + $0x40] sm:$0xff]  ;;  %v36_v14 = vld [vmem:[%s3473_s0 + $0x48] sm:$0xff]  ;;  %v94_v15 = vpack.c.bf16 %v34_v12, %v33_v11  ;;  %v37_v17 = vld [vmem:[%s3473_s0 + $0x50] sm:$0xff] }
   0x5   :  { %2256 = vmatprep.mubr.msk.bf16.mxu0 %vm131_vm1, %v91_v4  ;;  %v95_v16 = vpack.c.bf16 %v36_v14, %v35_v13  ;;  %v38_v18 = vld [vmem:[%s3473_s0 + $0x58] sm:$0xff]  ;;  %v39_v19 = vld [vmem:[%s3473_s0 + $0x60] sm:$0xff]  ;;  %v40_v20 = vld [vmem:[%s3473_s0 + $0x68] sm:$0xff] }
   0x6   :  { %2257 = vmatmul.mubr.msk.bf16.vlgmr.msra.gmra.mxu0 %vm131_vm1, %v92_v8  ;;  %v96_v21 = vpack.c.bf16 %v38_v18, %v37_v17  ;;  %v97_v22 = vpack.c.bf16 %v40_v20, %v39_v19  ;;  %v41_v23 = vld [vmem:[%s3473_s0 + $0x70] sm:$0xff]  ;;  %v42_v24 = vld [vmem:[%s3473_s0 + $0x78] sm:$0xff]  ;;  %v43_v25 = vld [vmem:[%s3473_s0 + $0x80] sm:$0xff] }
   0x7   :  { %2260 = vmatprep.mubr.msk.bf16.mxu0 %vm131_vm1, %v93_v10  ;;  %v44_v26 = vld [vmem:[%s3473_s0 + $0x88] sm:$0xff]  ;;  %v2577_v27 = vld [vmem:[%s3474_s3 + $0x38] sm:$0xff]   ;;  %v2578_v28 = vld [vmem:[%s3474_s3 + $0x30] sm:$0xff]   ;;  %v98_v29 = vpack.c.bf16 %v42_v24, %v41_v23 }
   0x8   :  { %2320 = vmatprep.subr.bf16.mxu1 %v2577_v27  ;;  %v99_v30 = vpack.c.bf16 %v44_v26, %v43_v25  ;;  %v2579_v31 = vld [vmem:[%s3474_s3 + $0x28] sm:$0xff]   ;;  %v45_v32 = vld [vmem:[%s3473_s0 + $0x90] sm:$0xff]  ;;  %v46_v33 = vld [vmem:[%s3473_s0 + $0x98] sm:$0xff] }
   0x9   :  { %2321 = vmatpush3.bf16.msra.mxu1 %v2577_v27  ;;  %v2580_v34 = vld [vmem:[%s3474_s3 + $0x20] sm:$0xff]   ;;  %v48_v36 = vld [vmem:[%s3473_s0 + $0xa8] sm:$0xff]  ;;  %v100_v37 = vpack.c.bf16 %v46_v33, %v45_v32  ;;  %v2581_v39 = vld [vmem:[%s3474_s3 + $0x18] sm:$0xff]  }
   0xa   :  { %2322 = vmatprep.subr.bf16.mxu1 %v2578_v28  ;;  %v47_v35 = vld [vmem:[%s3473_s0 + $0xa0] sm:$0xff]  ;;  %v49_v40 = vld [vmem:[%s3473_s0 + $0xb0] sm:$0xff]  ;;  %v50_v41 = vld [vmem:[%s3473_s0 + $0xb8] sm:$0xff] }
   0xb   :  { %v101_v38 = vpack.c.bf16 %v48_v36, %v47_v35  ;;  %v51_v42 = vld [vmem:[%s3473_s0 + $0xc0] sm:$0xff]  ;;  %v52_v43 = vld [vmem:[%s3473_s0 + $0xc8] sm:$0xff]  ;;  %v102_v44 = vpack.c.bf16 %v50_v41, %v49_v40  ;;  %v53_v46 = vld [vmem:[%s3473_s0 + $0xd0] sm:$0xff] }
   0xc   :  { %v103_v45 = vpack.c.bf16 %v52_v43, %v51_v42  ;;  %v54_v47 = vld [vmem:[%s3473_s0 + $0xd8] sm:$0xff]  ;;  %v55_v48 = vld [vmem:[%s3473_s0 + $0xe0] sm:$0xff]  ;;  %v56_v49 = vld [vmem:[%s3473_s0 + $0xe8] sm:$0xff] }
   0xd   :  { %2323 = vmatpush3.bf16.msra.mxu1 %v2578_v28  ;;  %v104_v50 = vpack.c.bf16 %v54_v47, %v53_v46  ;;  %v105_v51 = vpack.c.bf16 %v56_v49, %v55_v48  ;;  %v57_v52 = vld [vmem:[%s3473_s0 + $0xf0] sm:$0xff]  ;;  %v58_v53 = vld [vmem:[%s3473_s0 + $0xf8] sm:$0xff]  ;;  %v59_v54 = vld [vmem:[%s3473_s0 + $0x100] sm:$0xff] }
   0xe   :  { %2261 = vmatmul.mubr.msk.bf16.gmra.mxu0 %vm131_vm1, %v94_v15  ;;  %2324 = vmatprep.subr.bf16.mxu1 %v2579_v31  ;;  %v60_v55 = vld [vmem:[%s3473_s0 + $0x108] sm:$0xff]  ;;  %v106_v56 = vpack.c.bf16 %v58_v53, %v57_v52  ;;  %v61_v58 = vld [vmem:[%s3473_s0 + $0x110] sm:$0xff]  ;;  %v62_v59 = vld [vmem:[%s3473_s0 + $0x118] sm:$0xff] }
   0xf   :  { %2264 = vmatprep.mubr.msk.bf16.mxu0 %vm131_vm1, %v95_v16  ;;  %v107_v57 = vpack.c.bf16 %v60_v55, %v59_v54  ;;  %v63_v60 = vld [vmem:[%s3473_s0 + $0x120] sm:$0xff]  ;;  %v64_v61 = vld [vmem:[%s3473_s0 + $0x128] sm:$0xff]  ;;  %v108_v62 = vpack.c.bf16 %v62_v59, %v61_v58  ;;  %v2582_v0 = vld [vmem:[%s3474_s3 + $0x10] sm:$0xff]  }
  0x10   :  { %v109_v63 = vpack.c.bf16 %v64_v61, %v63_v60  ;;  %v65_v1 = vld [vmem:[%s3473_s0 + $0x130] sm:$0xff]  ;;  %v66_v2 = vld [vmem:[%s3473_s0 + $0x138] sm:$0xff]  ;;  %v67_v3 = vld [vmem:[%s3473_s0 + $0x140] sm:$0xff] }
  0x11   :  { %2325 = vmatpush3.bf16.msra.mxu1 %v2579_v31  ;;  %v68_v4 = vld [vmem:[%s3473_s0 + $0x148] sm:$0xff]  ;;  %v110_v5 = vpack.c.bf16 %v66_v2, %v65_v1  ;;  %v2584_v8 = vld [vmem:[%s3474_s3] sm:$0xff]   ;;  %v69_v9 = vld [vmem:[%s3473_s0 + $0x150] sm:$0xff] }
  0x12   :  { %2326 = vmatprep.subr.bf16.mxu1 %v2580_v34  ;;  %v2583_v6 = vld [vmem:[%s3474_s3 + $0x8] sm:$0xff]   ;;  %v111_v7 = vpack.c.bf16 %v68_v4, %v67_v3  ;;  %v70_v10 = vld [vmem:[%s3473_s0 + $0x158] sm:$0xff]  ;;  %v71_v11 = vld [vmem:[%s3473_s0 + $0x160] sm:$0xff] }
  0x13   :  { %v72_v12 = vld [vmem:[%s3473_s0 + $0x168] sm:$0xff]  ;;  %v112_v13 = vpack.c.bf16 %v70_v10, %v69_v9  ;;  %v73_v15 = vld [vmem:[%s3473_s0 + $0x170] sm:$0xff]  ;;  %v74_v16 = vld [vmem:[%s3473_s0 + $0x178] sm:$0xff] }
  0x14   :  { %v113_v14 = vpack.c.bf16 %v72_v12, %v71_v11  ;;  %v75_v17 = vld [vmem:[%s3473_s0 + $0x180] sm:$0xff]  ;;  %v76_v18 = vld [vmem:[%s3473_s0 + $0x188] sm:$0xff]  ;;  %v114_v19 = vpack.c.bf16 %v74_v16, %v73_v15  ;;  %v81_v27 = vld [vmem:[%s3473_s0 + $0x1b0] sm:$0xff] }
  0x15   :  { %2327 = vmatpush3.bf16.msra.mxu1 %v2580_v34  ;;  %v115_v20 = vpack.c.bf16 %v76_v18, %v75_v17  ;;  %v79_v23 = vld [vmem:[%s3473_s0 + $0x1a0] sm:$0xff]  ;;  %v80_v24 = vld [vmem:[%s3473_s0 + $0x1a8] sm:$0xff]  ;;  %v82_v28 = vld [vmem:[%s3473_s0 + $0x1b8] sm:$0xff] }
  0x16   :  { %2265 = vmatmul.mubr.msk.bf16.gmra.mxu0 %vm131_vm1, %v96_v21  ;;  %2328 = vmatprep.subr.bf16.mxu1 %v2581_v39  ;;  %v77_v21 = vld [vmem:[%s3473_s0 + $0x190] sm:$0xff]  ;;  %v117_v26 = vpack.c.bf16 %v80_v24, %v79_v23  ;;  %v118_v31 = vpack.c.bf16 %v82_v28, %v81_v27  ;;  %v86_v34 = vld [vmem:[%s3473_s0 + $0x1d8] sm:$0xff]  ;;  %v87_v35 = vld [vmem:[%s3473_s0 + $0x1e0] sm:$0xff] }
  0x17   :  { %2268 = vmatprep.mubr.msk.bf16.mxu0 %vm131_vm1, %v97_v22  ;;  %v78_v22 = vld [vmem:[%s3473_s0 + $0x198] sm:$0xff]  ;;  %v85_v33 = vld [vmem:[%s3473_s0 + $0x1d0] sm:$0xff]  ;;  %v88_v36 = vld [vmem:[%s3473_s0 + $0x1e8] sm:$0xff] }
  0x18   :  { %v116_v25 = vpack.c.bf16 %v78_v22, %v77_v21  ;;  %v90_v40 = vld [vmem:[%s3473_s0 + $0x1f8] sm:$0xff]  ;;  %v2586_v43 = vld [vmem:[%s3474_s3 + $0x70] sm:$0xff]   ;;  %v2904_v47 = vld [vmem:[%s3475_s2] ss:$0 sm:$0xff] }
  0x19   :  { %2329 = vmatpush3.bf16.msra.mxu1 %v2581_v39  ;;  %v89_v39 = vld [vmem:[%s3473_s0 + $0x1f0] sm:$0xff]  ;;  %v2585_v42 = vld [vmem:[%s3474_s3 + $0x78] sm:$0xff]   ;;  %v2588_v53 = vld [vmem:[%s3474_s3 + $0x60] sm:$0xff]  }
  0x1a   :  { %2330 = vmatprep.subr.bf16.mxu1 %v2582_v0  ;;  %v122_v41 = vpack.c.bf16 %v90_v40, %v89_v39  ;;  %2400 = vmatprep.subr.bf16.mxu0 %v2585_v42  ;;  %v2589_v54 = vld [vmem:[%s3474_s3 + $0x58] sm:$0xff]  }
  0x1b   :  { %2401 = vmatpush3.bf16.msra.mxu0 %v2585_v42 }
  0x1c   :  { %2402 = vmatprep.subr.bf16.mxu0 %v2586_v43 }
  0x1d   :  { %2331 = vmatpush3.bf16.msra.mxu1 %v2582_v0 }
  0x1e   :  { %2269 = vmatmul.mubr.msk.bf16.gmra.mxu0 %vm131_vm1, %v98_v29  ;;  %2332 = vmatprep.subr.bf16.mxu1 %v2583_v6  ;;  %v83_v29 = vld [vmem:[%s3473_s0 + $0x1c0] sm:$0xff] }
  0x1f   :  { %2272 = vmatprep.mubr.msk.bf16.mxu0 %vm131_vm1, %v99_v30  ;;  %v84_v30 = vld [vmem:[%s3473_s0 + $0x1c8] sm:$0xff]  ;;  %2403 = vmatpush3.bf16.msra.mxu0 %v2586_v43 }
  0x20   :  { %v119_v32 = vpack.c.bf16 %v84_v30, %v83_v29 }
  0x21   :  { %2333 = vmatpush3.bf16.msra.mxu1 %v2583_v6  ;;  %v2591_v6 = vld [vmem:[%s3474_s3 + $0x48] sm:$0xff]  }
  0x22   :  { %2334 = vmatprep.subr.bf16.mxu1 %v2584_v8 }
  0x25   :  { %2335 = vmatpush3.bf16.msra.mxu1 %v2584_v8 }
  0x26   :  { %2273 = vmatmul.mubr.msk.bf16.gmra.mxu0 %vm131_vm1, %v100_v37  ;;  %v120_v37 = vpack.c.bf16 %v86_v34, %v85_v33 }
  0x27   :  { %2276 = vmatprep.mubr.msk.bf16.mxu0 %vm131_vm1, %v101_v38  ;;  %v121_v38 = vpack.c.bf16 %v88_v36, %v87_v35 }
  0x2e   :  { %2277 = vmatmul.mubr.msk.bf16.gmra.mxu0 %vm131_vm1, %v102_v44  ;;  %v2587_v44 = vld [vmem:[%s3474_s3 + $0x68] sm:$0xff]  }
  0x2f   :  { %2280 = vmatprep.mubr.msk.bf16.mxu0 %vm131_vm1, %v103_v45  ;;  %2404 = vmatprep.subr.bf16.mxu0 %v2587_v44 }
  0x30   :  { %2405 = vmatpush3.bf16.msra.mxu0 %v2587_v44 }
  0x31   :  { %2406 = vmatprep.subr.bf16.mxu0 %v2588_v53 }
  0x34   :  { %2407 = vmatpush3.bf16.msra.mxu0 %v2588_v53 }
  0x35   :  { %2408 = vmatprep.subr.bf16.mxu0 %v2589_v54 }
  0x36   :  { %2281 = vmatmul.mubr.msk.bf16.gmra.mxu0 %vm131_vm1, %v104_v50 }
  0x37   :  { %2284 = vmatprep.mubr.msk.bf16.mxu0 %vm131_vm1, %v105_v51 }
  0x38   :  { %2409 = vmatpush3.bf16.msra.mxu0 %v2589_v54 }
  0x3e   :  { %2285 = vmatmul.mubr.msk.bf16.gmra.mxu0 %vm131_vm1, %v106_v56 }
  0x3f   :  { %2288 = vmatprep.mubr.msk.bf16.mxu0 %vm131_vm1, %v107_v57 }
  0x46   :  { %2289 = vmatmul.mubr.msk.bf16.gmra.mxu0 %vm131_vm1, %v108_v62  ;;  %v2590_v62 = vld [vmem:[%s3474_s3 + $0x50] sm:$0xff]  }
  0x47   :  { %2292 = vmatprep.mubr.msk.bf16.mxu0 %vm131_vm1, %v109_v63  ;;  %2410 = vmatprep.subr.bf16.mxu0 %v2590_v62 }
  0x48   :  { %2411 = vmatpush3.bf16.msra.mxu0 %v2590_v62 }
  0x49   :  { %2412 = vmatprep.subr.bf16.mxu0 %v2591_v6 }
  0x4c   :  { %2413 = vmatpush3.bf16.msra.mxu0 %v2591_v6 }
  0x4e   :  { %2293 = vmatmul.mubr.msk.bf16.gmra.mxu0 %vm131_vm1, %v110_v5 }
  0x4f   :  { %2296 = vmatprep.mubr.msk.bf16.mxu0 %vm131_vm1, %v111_v7 }
  0x56   :  { %2297 = vmatmul.mubr.msk.bf16.gmra.mxu0 %vm131_vm1, %v112_v13 }
  0x57   :  { %2300 = vmatprep.mubr.msk.bf16.mxu0 %vm131_vm1, %v113_v14  ;;  %v2592_v14 = vld [vmem:[%s3474_s3 + $0x40] sm:$0xff]  }
  0x58   :  { %2414 = vmatprep.subr.bf16.mxu0 %v2592_v14 }
  0x59   :  { %2415 = vmatpush3.bf16.msra.mxu0 %v2592_v14 }
  0x5e   :  { %2301 = vmatmul.mubr.msk.bf16.gmra.mxu0 %vm131_vm1, %v114_v19 }
  0x5f   :  { %2304 = vmatprep.mubr.msk.bf16.mxu0 %vm131_vm1, %v115_v20 }
  0x66   :  { %2305 = vmatmul.mubr.msk.bf16.gmra.mxu0 %vm131_vm1, %v116_v25 }
  0x67   :  { %2308 = vmatprep.mubr.msk.bf16.mxu0 %vm131_vm1, %v117_v26 }
  0x6e   :  { %2309 = vmatmul.mubr.msk.bf16.gmra.mxu0 %vm131_vm1, %v118_v31 }
  0x6f   :  { %2312 = vmatprep.mubr.msk.bf16.mxu0 %vm131_vm1, %v119_v32 }
  0x76   :  { %2313 = vmatmul.mubr.msk.bf16.gmra.mxu0 %vm131_vm1, %v120_v37 }
  0x77   :  { %2316 = vmatprep.mubr.msk.bf16.mxu0 %vm131_vm1, %v121_v38 }
  0x7e   :  { %2317 = vmatmul.mubr.msk.bf16.gmra.mxu0 %vm131_vm1, %v122_v41 }
  0xc6   :  { %v2258_v45 = vpop.f32.mrf.mxu0 }
  0xc7   :  { %v275_v51 = vadd.f32 %v2258_v45, %v2904_v47 }
  0xc8   :  { %v266_v46 = vpop.f32.mrf.mxu0 }
  0xc9   :  { %v267_v49 = vadd.f32 %v2904_v47, %v266_v46  ;;  %v523_v60 = vmax.f32 %v275_v51, 0.0 }
  0xca   :  { %v2259_v48 = vpop.f32.mrf.mxu0 }
  0xcb   :  { %v278_v50 = vadd.f32 %v2259_v48, %v2904_v47  ;;  %v521_v58 = vmax.f32 %v267_v49, 0.0 }
  0xcc   :  { %v269_v52 = vpop.f32.mrf.mxu0 }
  0xcd   :  { %v270_v55 = vadd.f32 %v2904_v47, %v269_v52  ;;  %v524_v56 = vmax.f32 %v278_v50, 0.0 }
  0xce   :  { %v2262_v57 = vpop.f32.mrf.mxu0 }
  0xcf   :  { %v522_v59 = vmax.f32 %v270_v55, 0.0  ;;  %v586_v0 = vpack.c.bf16 %v524_v56, %v523_v60  ;;  %v291_v4 = vadd.f32 %v2262_v57, %v2904_v47 }
  0xd0   :  { %v282_v61 = vpop.f32.mrf.mxu0 }
  0xd1   :  { %v585_v63 = vpack.c.bf16 %v522_v59, %v521_v58  ;;  %v283_v2 = vadd.f32 %v2904_v47, %v282_v61  ;;  %v527_v12 = vmax.f32 %v291_v4, 0.0 }
  0xd2   :  { %v2263_v1 = vpop.f32.mrf.mxu0 }
  0xd3   :  { %v294_v3 = vadd.f32 %v2263_v1, %v2904_v47  ;;  %2336 = vmatprep.mubr.bf16.mxu1 %v585_v63  ;;  %v525_v10 = vmax.f32 %v283_v2, 0.0 }
  0xd4   :  { %v285_v5 = vpop.f32.mrf.mxu0  ;;  %2337 = vmatmul.mubr.bf16.vlgmr.msra.gmra.mxu1 %v586_v0 }
  0xd5   :  { %v286_v7 = vadd.f32 %v2904_v47, %v285_v5  ;;  %v528_v8 = vmax.f32 %v294_v3, 0.0 }
  0xd6   :  { %v2266_v9 = vpop.f32.mrf.mxu0 }
  0xd7   :  { %v526_v11 = vmax.f32 %v286_v7, 0.0  ;;  %v588_v16 = vpack.c.bf16 %v528_v8, %v527_v12  ;;  %v307_v20 = vadd.f32 %v2266_v9, %v2904_v47 }
  0xd8   :  { %v298_v13 = vpop.f32.mrf.mxu0 }
  0xd9   :  { %v587_v15 = vpack.c.bf16 %v526_v11, %v525_v10  ;;  %v299_v18 = vadd.f32 %v2904_v47, %v298_v13  ;;  %v531_v27 = vmax.f32 %v307_v20, 0.0 }
  0xda   :  { %v2267_v17 = vpop.f32.mrf.mxu0 }
  0xdb   :  { %v310_v19 = vadd.f32 %v2267_v17, %v2904_v47  ;;  %2340 = vmatprep.mubr.bf16.mxu1 %v587_v15  ;;  %v529_v25 = vmax.f32 %v299_v18, 0.0 }
  0xdc   :  { %v301_v21 = vpop.f32.mrf.mxu0  ;;  %2341 = vmatmul.mubr.bf16.gmra.mxu1 %v588_v16 }
  0xdd   :  { %v302_v22 = vadd.f32 %v2904_v47, %v301_v21  ;;  %v532_v23 = vmax.f32 %v310_v19, 0.0 }
  0xde   :  { %v2270_v24 = vpop.f32.mrf.mxu0 }
  0xdf   :  { %v530_v26 = vmax.f32 %v302_v22, 0.0  ;;  %v590_v30 = vpack.c.bf16 %v532_v23, %v531_v27  ;;  %v323_v34 = vadd.f32 %v2270_v24, %v2904_v47 }
  0xe0   :  { %v314_v28 = vpop.f32.mrf.mxu0 }
  0xe1   :  { %v589_v29 = vpack.c.bf16 %v530_v26, %v529_v25  ;;  %v315_v32 = vadd.f32 %v2904_v47, %v314_v28  ;;  %v535_v41 = vmax.f32 %v323_v34, 0.0 }
  0xe2   :  { %v2271_v31 = vpop.f32.mrf.mxu0 }
  0xe3   :  { %v326_v33 = vadd.f32 %v2271_v31, %v2904_v47  ;;  %2344 = vmatprep.mubr.bf16.mxu1 %v589_v29  ;;  %v533_v39 = vmax.f32 %v315_v32, 0.0 }
  0xe4   :  { %v317_v35 = vpop.f32.mrf.mxu0  ;;  %2345 = vmatmul.mubr.bf16.gmra.mxu1 %v590_v30 }
  0xe5   :  { %v318_v36 = vadd.f32 %v2904_v47, %v317_v35  ;;  %v536_v37 = vmax.f32 %v326_v33, 0.0 }
  0xe6   :  { %v2274_v38 = vpop.f32.mrf.mxu0 }
  0xe7   :  { %v534_v40 = vmax.f32 %v318_v36, 0.0  ;;  %v592_v44 = vpack.c.bf16 %v536_v37, %v535_v41  ;;  %v339_v49 = vadd.f32 %v2274_v38, %v2904_v47 }
  0xe8   :  { %v330_v42 = vpop.f32.mrf.mxu0 }
  0xe9   :  { %v591_v43 = vpack.c.bf16 %v534_v40, %v533_v39  ;;  %v331_v46 = vadd.f32 %v2904_v47, %v330_v42  ;;  %v539_v56 = vmax.f32 %v339_v49, 0.0 }
  0xea   :  { %v2275_v45 = vpop.f32.mrf.mxu0 }
  0xeb   :  { %v342_v48 = vadd.f32 %v2275_v45, %v2904_v47  ;;  %2348 = vmatprep.mubr.bf16.mxu1 %v591_v43  ;;  %v537_v54 = vmax.f32 %v331_v46, 0.0 }
  0xec   :  { %v333_v50 = vpop.f32.mrf.mxu0  ;;  %2349 = vmatmul.mubr.bf16.gmra.mxu1 %v592_v44 }
  0xed   :  { %v334_v51 = vadd.f32 %v2904_v47, %v333_v50  ;;  %v540_v52 = vmax.f32 %v342_v48, 0.0 }
  0xee   :  { %v2278_v53 = vpop.f32.mrf.mxu0 }
  0xef   :  { %v538_v55 = vmax.f32 %v334_v51, 0.0  ;;  %v594_v59 = vpack.c.bf16 %v540_v52, %v539_v56  ;;  %v355_v63 = vadd.f32 %v2278_v53, %v2904_v47 }
  0xf0   :  { %v346_v57 = vpop.f32.mrf.mxu0 }
  0xf1   :  { %v593_v58 = vpack.c.bf16 %v538_v55, %v537_v54  ;;  %v347_v61 = vadd.f32 %v2904_v47, %v346_v57  ;;  %v543_v6 = vmax.f32 %v355_v63, 0.0 }
  0xf2   :  { %v2279_v60 = vpop.f32.mrf.mxu0 }
  0xf3   :  { %v358_v62 = vadd.f32 %v2279_v60, %v2904_v47  ;;  %2352 = vmatprep.mubr.bf16.mxu1 %v593_v58  ;;  %v541_v4 = vmax.f32 %v347_v61, 0.0 }
  0xf4   :  { %v349_v0 = vpop.f32.mrf.mxu0  ;;  %2353 = vmatmul.mubr.bf16.gmra.mxu1 %v594_v59 }
  0xf5   :  { %v350_v1 = vadd.f32 %v2904_v47, %v349_v0  ;;  %v544_v2 = vmax.f32 %v358_v62, 0.0 }
  0xf6   :  { %v2282_v3 = vpop.f32.mrf.mxu0 }
  0xf7   :  { %v542_v5 = vmax.f32 %v350_v1, 0.0  ;;  %v596_v9 = vpack.c.bf16 %v544_v2, %v543_v6  ;;  %v371_v13 = vadd.f32 %v2282_v3, %v2904_v47 }
  0xf8   :  { %v362_v7 = vpop.f32.mrf.mxu0 }
  0xf9   :  { %v595_v8 = vpack.c.bf16 %v542_v5, %v541_v4  ;;  %v363_v11 = vadd.f32 %v2904_v47, %v362_v7  ;;  %v547_v20 = vmax.f32 %v371_v13, 0.0 }
  0xfa   :  { %v2283_v10 = vpop.f32.mrf.mxu0 }
  0xfb   :  { %v374_v12 = vadd.f32 %v2283_v10, %v2904_v47  ;;  %2356 = vmatprep.mubr.bf16.mxu1 %v595_v8  ;;  %v545_v18 = vmax.f32 %v363_v11, 0.0 }
  0xfc   :  { %v365_v14 = vpop.f32.mrf.mxu0  ;;  %2357 = vmatmul.mubr.bf16.gmra.mxu1 %v596_v9 }
  0xfd   :  { %v366_v15 = vadd.f32 %v2904_v47, %v365_v14  ;;  %v548_v16 = vmax.f32 %v374_v12, 0.0 }
  0xfe   :  { %v2286_v17 = vpop.f32.mrf.mxu0 }
  0xff   :  { %v546_v19 = vmax.f32 %v366_v15, 0.0  ;;  %v598_v23 = vpack.c.bf16 %v548_v16, %v547_v20  ;;  %v387_v27 = vadd.f32 %v2286_v17, %v2904_v47 }
 0x100   :  { %v378_v21 = vpop.f32.mrf.mxu0 }
 0x101   :  { %v597_v22 = vpack.c.bf16 %v546_v19, %v545_v18  ;;  %v379_v25 = vadd.f32 %v2904_v47, %v378_v21  ;;  %v551_v34 = vmax.f32 %v387_v27, 0.0 }
 0x102   :  { %v2287_v24 = vpop.f32.mrf.mxu0 }
 0x103   :  { %v390_v26 = vadd.f32 %v2287_v24, %v2904_v47  ;;  %2360 = vmatprep.mubr.bf16.mxu1 %v597_v22  ;;  %v549_v32 = vmax.f32 %v379_v25, 0.0 }
 0x104   :  { %v381_v28 = vpop.f32.mrf.mxu0  ;;  %2361 = vmatmul.mubr.bf16.gmra.mxu1 %v598_v23 }
 0x105   :  { %v382_v29 = vadd.f32 %v2904_v47, %v381_v28  ;;  %v552_v30 = vmax.f32 %v390_v26, 0.0 }
 0x106   :  { %v2290_v31 = vpop.f32.mrf.mxu0 }
 0x107   :  { %v550_v33 = vmax.f32 %v382_v29, 0.0  ;;  %v600_v37 = vpack.c.bf16 %v552_v30, %v551_v34  ;;  %v403_v41 = vadd.f32 %v2290_v31, %v2904_v47 }
 0x108   :  { %v394_v35 = vpop.f32.mrf.mxu0 }
 0x109   :  { %v599_v36 = vpack.c.bf16 %v550_v33, %v549_v32  ;;  %v395_v39 = vadd.f32 %v2904_v47, %v394_v35  ;;  %v555_v49 = vmax.f32 %v403_v41, 0.0 }
 0x10a   :  { %v2291_v38 = vpop.f32.mrf.mxu0 }
 0x10b   :  { %v406_v40 = vadd.f32 %v2291_v38, %v2904_v47  ;;  %2364 = vmatprep.mubr.bf16.mxu1 %v599_v36  ;;  %v553_v46 = vmax.f32 %v395_v39, 0.0 }
 0x10c   :  { %v397_v42 = vpop.f32.mrf.mxu0  ;;  %2365 = vmatmul.mubr.bf16.gmra.mxu1 %v600_v37 }
 0x10d   :  { %v398_v43 = vadd.f32 %v2904_v47, %v397_v42  ;;  %v556_v44 = vmax.f32 %v406_v40, 0.0 }
 0x10e   :  { %v2294_v45 = vpop.f32.mrf.mxu0 }
 0x10f   :  { %v554_v48 = vmax.f32 %v398_v43, 0.0  ;;  %v602_v52 = vpack.c.bf16 %v556_v44, %v555_v49  ;;  %v419_v56 = vadd.f32 %v2294_v45, %v2904_v47 }
 0x110   :  { %v410_v50 = vpop.f32.mrf.mxu0 }
 0x111   :  { %v601_v51 = vpack.c.bf16 %v554_v48, %v553_v46  ;;  %v411_v54 = vadd.f32 %v2904_v47, %v410_v50  ;;  %v559_v63 = vmax.f32 %v419_v56, 0.0 }
 0x112   :  { %v2295_v53 = vpop.f32.mrf.mxu0 }
 0x113   :  { %v422_v55 = vadd.f32 %v2295_v53, %v2904_v47  ;;  %2368 = vmatprep.mubr.bf16.mxu1 %v601_v51  ;;  %v557_v61 = vmax.f32 %v411_v54, 0.0 }
 0x114   :  { %v413_v57 = vpop.f32.mrf.mxu0  ;;  %2369 = vmatmul.mubr.bf16.gmra.mxu1 %v602_v52 }
 0x115   :  { %v414_v58 = vadd.f32 %v2904_v47, %v413_v57  ;;  %v560_v59 = vmax.f32 %v422_v55, 0.0 }
 0x116   :  { %v2298_v60 = vpop.f32.mrf.mxu0 }
 0x117   :  { %v558_v62 = vmax.f32 %v414_v58, 0.0  ;;  %v604_v2 = vpack.c.bf16 %v560_v59, %v559_v63  ;;  %v435_v6 = vadd.f32 %v2298_v60, %v2904_v47 }
 0x118   :  { %v426_v0 = vpop.f32.mrf.mxu0 }
 0x119   :  { %v603_v1 = vpack.c.bf16 %v558_v62, %v557_v61  ;;  %v427_v4 = vadd.f32 %v2904_v47, %v426_v0  ;;  %v563_v13 = vmax.f32 %v435_v6, 0.0 }
 0x11a   :  { %v2299_v3 = vpop.f32.mrf.mxu0 }
 0x11b   :  { %v438_v5 = vadd.f32 %v2299_v3, %v2904_v47  ;;  %2372 = vmatprep.mubr.bf16.mxu1 %v603_v1  ;;  %v561_v11 = vmax.f32 %v427_v4, 0.0 }
 0x11c   :  { %v429_v7 = vpop.f32.mrf.mxu0  ;;  %2373 = vmatmul.mubr.bf16.gmra.mxu1 %v604_v2 }
 0x11d   :  { %v430_v8 = vadd.f32 %v2904_v47, %v429_v7  ;;  %v564_v9 = vmax.f32 %v438_v5, 0.0 }
 0x11e   :  { %v2302_v10 = vpop.f32.mrf.mxu0 }
 0x11f   :  { %v562_v12 = vmax.f32 %v430_v8, 0.0  ;;  %v606_v16 = vpack.c.bf16 %v564_v9, %v563_v13  ;;  %v451_v20 = vadd.f32 %v2302_v10, %v2904_v47 }
 0x120   :  { %v442_v14 = vpop.f32.mrf.mxu0 }
 0x121   :  { %v605_v15 = vpack.c.bf16 %v562_v12, %v561_v11  ;;  %v443_v18 = vadd.f32 %v2904_v47, %v442_v14  ;;  %v567_v27 = vmax.f32 %v451_v20, 0.0 }
 0x122   :  { %v2303_v17 = vpop.f32.mrf.mxu0 }
 0x123   :  { %v454_v19 = vadd.f32 %v2303_v17, %v2904_v47  ;;  %2376 = vmatprep.mubr.bf16.mxu1 %v605_v15  ;;  %v565_v25 = vmax.f32 %v443_v18, 0.0 }
 0x124   :  { %v445_v21 = vpop.f32.mrf.mxu0  ;;  %2377 = vmatmul.mubr.bf16.gmra.mxu1 %v606_v16 }
 0x125   :  { %v446_v22 = vadd.f32 %v2904_v47, %v445_v21  ;;  %v568_v23 = vmax.f32 %v454_v19, 0.0 }
 0x126   :  { %v2306_v24 = vpop.f32.mrf.mxu0 }
 0x127   :  { %v566_v26 = vmax.f32 %v446_v22, 0.0  ;;  %v608_v30 = vpack.c.bf16 %v568_v23, %v567_v27  ;;  %v467_v34 = vadd.f32 %v2306_v24, %v2904_v47  ;;  %v2593_v22 = vld [vmem:[%s3476_s5 + $0x38] sm:$0xff]   ;;  %v2594_v23 = vld [vmem:[%s3476_s5 + $0x30] sm:$0xff]  }
 0x128   :  { %v458_v28 = vpop.f32.mrf.mxu0  ;;  %2560 = vmatprep.subr.bf16.mxu1 %v2593_v22  ;;  %2480 = vmatprep.subr.bf16.mxu0 %v2593_v22 }
 0x129   :  { %v607_v29 = vpack.c.bf16 %v566_v26, %v565_v25  ;;  %v459_v32 = vadd.f32 %v2904_v47, %v458_v28  ;;  %v571_v41 = vmax.f32 %v467_v34, 0.0  ;;  %2568 = vmatpush3.bf16.msra.mxu1 %v2593_v22  ;;  %v2994_v25 = vld [vmem:[%s3477_s4] ss:$0 sm:$0xff]  ;;  %v2595_v26 = vld [vmem:[%s3476_s5 + $0x28] sm:$0xff]  }
 0x12a   :  { %v2307_v31 = vpop.f32.mrf.mxu0  ;;  %2561 = vmatprep.subr.bf16.mxu1 %v2594_v23 }
 0x12b   :  { %v470_v33 = vadd.f32 %v2307_v31, %v2904_v47  ;;  %2380 = vmatprep.mubr.bf16.mxu1 %v607_v29  ;;  %v569_v39 = vmax.f32 %v459_v32, 0.0  ;;  %v2596_v32 = vld [vmem:[%s3476_s5 + $0x20] sm:$0xff]  }
 0x12c   :  { %v461_v35 = vpop.f32.mrf.mxu0  ;;  %2381 = vmatmul.mubr.bf16.gmra.mxu1 %v608_v30 }
 0x12d   :  { %v462_v36 = vadd.f32 %v2904_v47, %v461_v35  ;;  %v572_v37 = vmax.f32 %v470_v33, 0.0  ;;  %2569 = vmatpush3.bf16.msra.mxu1 %v2594_v23 }
 0x12e   :  { %v2310_v38 = vpop.f32.mrf.mxu0  ;;  %2562 = vmatprep.subr.bf16.mxu1 %v2595_v26 }
 0x12f   :  { %v570_v40 = vmax.f32 %v462_v36, 0.0  ;;  %v610_v44 = vpack.c.bf16 %v572_v37, %v571_v41  ;;  %v483_v49 = vadd.f32 %v2310_v38, %v2904_v47  ;;  %v2597_v38 = vld [vmem:[%s3476_s5 + $0x18] sm:$0xff]  }
 0x130   :  { %v474_v42 = vpop.f32.mrf.mxu0 }
 0x131   :  { %v609_v43 = vpack.c.bf16 %v570_v40, %v569_v39  ;;  %v475_v46 = vadd.f32 %v2904_v47, %v474_v42  ;;  %v575_v56 = vmax.f32 %v483_v49, 0.0  ;;  %2570 = vmatpush3.bf16.msra.mxu1 %v2595_v26 }
 0x132   :  { %v2311_v45 = vpop.f32.mrf.mxu0  ;;  %2563 = vmatprep.subr.bf16.mxu1 %v2596_v32 }
 0x133   :  { %v486_v48 = vadd.f32 %v2311_v45, %v2904_v47  ;;  %2384 = vmatprep.mubr.bf16.mxu1 %v609_v43  ;;  %v573_v54 = vmax.f32 %v475_v46, 0.0  ;;  %v2598_v46 = vld [vmem:[%s3476_s5 + $0x10] sm:$0xff]  }
 0x134   :  { %v477_v50 = vpop.f32.mrf.mxu0  ;;  %2385 = vmatmul.mubr.bf16.gmra.mxu1 %v610_v44 }
 0x135   :  { %v478_v51 = vadd.f32 %v2904_v47, %v477_v50  ;;  %v576_v52 = vmax.f32 %v486_v48, 0.0  ;;  %2571 = vmatpush3.bf16.msra.mxu1 %v2596_v32 }
 0x136   :  { %v2314_v53 = vpop.f32.mrf.mxu0  ;;  %2564 = vmatprep.subr.bf16.mxu1 %v2597_v38 }
 0x137   :  { %v574_v55 = vmax.f32 %v478_v51, 0.0  ;;  %v612_v59 = vpack.c.bf16 %v576_v52, %v575_v56  ;;  %v499_v63 = vadd.f32 %v2314_v53, %v2904_v47 }
 0x138   :  { %v490_v57 = vpop.f32.mrf.mxu0 }
 0x139   :  { %v611_v58 = vpack.c.bf16 %v574_v55, %v573_v54  ;;  %v491_v61 = vadd.f32 %v2904_v47, %v490_v57  ;;  %v579_v6 = vmax.f32 %v499_v63, 0.0  ;;  %2572 = vmatpush3.bf16.msra.mxu1 %v2597_v38  ;;  %v2599_v55 = vld [vmem:[%s3476_s5 + $0x8] sm:$0xff]  }
 0x13a   :  { %v2315_v60 = vpop.f32.mrf.mxu0  ;;  %2565 = vmatprep.subr.bf16.mxu1 %v2598_v46 }
 0x13b   :  { %v502_v62 = vadd.f32 %v2315_v60, %v2904_v47  ;;  %2388 = vmatprep.mubr.bf16.mxu1 %v611_v58  ;;  %v577_v4 = vmax.f32 %v491_v61, 0.0 }
 0x13c   :  { %v493_v0 = vpop.f32.mrf.mxu0  ;;  %2389 = vmatmul.mubr.bf16.gmra.mxu1 %v612_v59 }
 0x13d   :  { %v494_v1 = vadd.f32 %v2904_v47, %v493_v0  ;;  %v580_v2 = vmax.f32 %v502_v62, 0.0  ;;  %2573 = vmatpush3.bf16.msra.mxu1 %v2598_v46 }
 0x13e   :  { %v2318_v3 = vpop.f32.mrf.mxu0  ;;  %2566 = vmatprep.subr.bf16.mxu1 %v2599_v55 }
 0x13f   :  { %v578_v5 = vmax.f32 %v494_v1, 0.0  ;;  %v614_v9 = vpack.c.bf16 %v580_v2, %v579_v6  ;;  %v515_v13 = vadd.f32 %v2318_v3, %v2904_v47 }
 0x140   :  { %v506_v7 = vpop.f32.mrf.mxu0 }
 0x141   :  { %v613_v8 = vpack.c.bf16 %v578_v5, %v577_v4  ;;  %v507_v11 = vadd.f32 %v2904_v47, %v506_v7  ;;  %v583_v19 = vmax.f32 %v515_v13, 0.0  ;;  %2574 = vmatpush3.bf16.msra.mxu1 %v2599_v55 }
 0x142   :  { %v2319_v10 = vpop.f32.mrf.mxu0 }
 0x143   :  { %v518_v12 = vadd.f32 %v2319_v10, %v2904_v47  ;;  %2392 = vmatprep.mubr.bf16.mxu1 %v613_v8  ;;  %v581_v17 = vmax.f32 %v507_v11, 0.0 }
 0x144   :  { %v509_v14 = vpop.f32.mrf.mxu0  ;;  %2393 = vmatmul.mubr.bf16.gmra.mxu1 %v614_v9 }
 0x145   :  { %v510_v15 = vadd.f32 %v2904_v47, %v509_v14  ;;  %v584_v16 = vmax.f32 %v518_v12, 0.0 }
 0x147   :  { %v582_v18 = vmax.f32 %v510_v15, 0.0  ;;  %v616_v21 = vpack.c.bf16 %v584_v16, %v583_v19 }
 0x149   :  { %v615_v20 = vpack.c.bf16 %v582_v18, %v581_v17 }
 0x14b   :  { %2396 = vmatprep.mubr.bf16.mxu1 %v615_v20 }
 0x14c   :  { %2397 = vmatmul.mubr.bf16.gmra.mxu1 %v616_v21 }
 0x194   :  { %v2338_v47 = vpop.f32.mrf.mxu1 }
 0x195   :  { %v731_v30 = vadd.f32 %v2338_v47, %v2994_v25 }
 0x196   :  { %v722_v24 = vpop.f32.mrf.mxu1 }
 0x197   :  { %v723_v28 = vadd.f32 %v2994_v25, %v722_v24  ;;  %v979_v39 = vmax.f32 %v731_v30, 0.0 }
 0x198   :  { %v2339_v27 = vpop.f32.mrf.mxu1 }
 0x199   :  { %v734_v29 = vadd.f32 %v2339_v27, %v2994_v25  ;;  %v977_v36 = vmax.f32 %v723_v28, 0.0 }
 0x19a   :  { %v725_v31 = vpop.f32.mrf.mxu1 }
 0x19b   :  { %v726_v33 = vadd.f32 %v2994_v25, %v725_v31  ;;  %v980_v34 = vmax.f32 %v734_v29, 0.0 }
 0x19c   :  { %v2342_v35 = vpop.f32.mrf.mxu1 }
 0x19d   :  { %v978_v37 = vmax.f32 %v726_v33, 0.0  ;;  %v1042_v42 = vpack.c.bf16 %v980_v34, %v979_v39  ;;  %v747_v48 = vadd.f32 %v2342_v35, %v2994_v25 }
 0x19e   :  { %v738_v40 = vpop.f32.mrf.mxu1 }
 0x19f   :  { %v1041_v41 = vpack.c.bf16 %v978_v37, %v977_v36  ;;  %v739_v44 = vadd.f32 %v2994_v25, %v738_v40  ;;  %v983_v56 = vmax.f32 %v747_v48, 0.0 }
 0x1a0   :  { %v2343_v43 = vpop.f32.mrf.mxu1 }
 0x1a1   :  { %v750_v45 = vadd.f32 %v2343_v43, %v2994_v25  ;;  %2416 = vmatprep.mubr.bf16.mxu0 %v1041_v41  ;;  %v981_v53 = vmax.f32 %v739_v44, 0.0 }
 0x1a2   :  { %v741_v49 = vpop.f32.mrf.mxu1  ;;  %2417 = vmatmul.mubr.bf16.vlgmr.msra.gmra.mxu0 %v1042_v42 }
 0x1a3   :  { %v742_v50 = vadd.f32 %v2994_v25, %v741_v49  ;;  %2481 = vmatpush3.bf16.msra.mxu0 %v2593_v22  ;;  %v984_v51 = vmax.f32 %v750_v45, 0.0 }
 0x1a4   :  { %v2346_v52 = vpop.f32.mrf.mxu1  ;;  %2482 = vmatprep.subr.bf16.mxu0 %v2594_v23 }
 0x1a5   :  { %v982_v54 = vmax.f32 %v742_v50, 0.0  ;;  %v1044_v59 = vpack.c.bf16 %v984_v51, %v983_v56  ;;  %v763_v63 = vadd.f32 %v2346_v52, %v2994_v25 }
 0x1a6   :  { %v754_v57 = vpop.f32.mrf.mxu1 }
 0x1a7   :  { %v1043_v58 = vpack.c.bf16 %v982_v54, %v981_v53  ;;  %2483 = vmatpush3.bf16.msra.mxu0 %v2594_v23  ;;  %v755_v61 = vadd.f32 %v2994_v25, %v754_v57  ;;  %v987_v6 = vmax.f32 %v763_v63, 0.0 }
 0x1a8   :  { %v2347_v60 = vpop.f32.mrf.mxu1  ;;  %2484 = vmatprep.subr.bf16.mxu0 %v2595_v26 }
 0x1a9   :  { %v766_v62 = vadd.f32 %v2347_v60, %v2994_v25  ;;  %2420 = vmatprep.mubr.bf16.mxu0 %v1043_v58  ;;  %v985_v4 = vmax.f32 %v755_v61, 0.0 }
 0x1aa   :  { %v757_v0 = vpop.f32.mrf.mxu1  ;;  %2421 = vmatmul.mubr.bf16.gmra.mxu0 %v1044_v59 }
 0x1ab   :  { %v758_v1 = vadd.f32 %v2994_v25, %v757_v0  ;;  %2485 = vmatpush3.bf16.msra.mxu0 %v2595_v26  ;;  %v988_v2 = vmax.f32 %v766_v62, 0.0 }
 0x1ac   :  { %v2350_v3 = vpop.f32.mrf.mxu1  ;;  %2486 = vmatprep.subr.bf16.mxu0 %v2596_v32 }
 0x1ad   :  { %v986_v5 = vmax.f32 %v758_v1, 0.0  ;;  %v1046_v9 = vpack.c.bf16 %v988_v2, %v987_v6  ;;  %v779_v13 = vadd.f32 %v2350_v3, %v2994_v25 }
 0x1ae   :  { %v770_v7 = vpop.f32.mrf.mxu1 }
 0x1af   :  { %v1045_v8 = vpack.c.bf16 %v986_v5, %v985_v4  ;;  %2487 = vmatpush3.bf16.msra.mxu0 %v2596_v32  ;;  %v771_v11 = vadd.f32 %v2994_v25, %v770_v7  ;;  %v991_v20 = vmax.f32 %v779_v13, 0.0 }
 0x1b0   :  { %v2351_v10 = vpop.f32.mrf.mxu1  ;;  %2488 = vmatprep.subr.bf16.mxu0 %v2597_v38 }
 0x1b1   :  { %v782_v12 = vadd.f32 %v2351_v10, %v2994_v25  ;;  %2424 = vmatprep.mubr.bf16.mxu0 %v1045_v8  ;;  %v989_v18 = vmax.f32 %v771_v11, 0.0 }
 0x1b2   :  { %v773_v14 = vpop.f32.mrf.mxu1  ;;  %2425 = vmatmul.mubr.bf16.gmra.mxu0 %v1046_v9 }
 0x1b3   :  { %v774_v15 = vadd.f32 %v2994_v25, %v773_v14  ;;  %2489 = vmatpush3.bf16.msra.mxu0 %v2597_v38  ;;  %v992_v16 = vmax.f32 %v782_v12, 0.0 }
 0x1b4   :  { %v2354_v17 = vpop.f32.mrf.mxu1  ;;  %2490 = vmatprep.subr.bf16.mxu0 %v2598_v46 }
 0x1b5   :  { %v990_v19 = vmax.f32 %v774_v15, 0.0  ;;  %v1048_v23 = vpack.c.bf16 %v992_v16, %v991_v20  ;;  %v795_v27 = vadd.f32 %v2354_v17, %v2994_v25 }
 0x1b6   :  { %v786_v21 = vpop.f32.mrf.mxu1 }
 0x1b7   :  { %v1047_v22 = vpack.c.bf16 %v990_v19, %v989_v18  ;;  %2491 = vmatpush3.bf16.msra.mxu0 %v2598_v46  ;;  %v787_v24 = vadd.f32 %v2994_v25, %v786_v21  ;;  %v995_v34 = vmax.f32 %v795_v27, 0.0 }
 0x1b8   :  { %v2355_v47 = vpop.f32.mrf.mxu1  ;;  %2492 = vmatprep.subr.bf16.mxu0 %v2599_v55 }
 0x1b9   :  { %v798_v26 = vadd.f32 %v2355_v47, %v2994_v25  ;;  %2428 = vmatprep.mubr.bf16.mxu0 %v1047_v22  ;;  %v993_v32 = vmax.f32 %v787_v24, 0.0 }
 0x1ba   :  { %v789_v28 = vpop.f32.mrf.mxu1  ;;  %2429 = vmatmul.mubr.bf16.gmra.mxu0 %v1048_v23 }
 0x1bb   :  { %v790_v29 = vadd.f32 %v2994_v25, %v789_v28  ;;  %2493 = vmatpush3.bf16.msra.mxu0 %v2599_v55  ;;  %v996_v30 = vmax.f32 %v798_v26, 0.0 }
 0x1bc   :  { %v2358_v31 = vpop.f32.mrf.mxu1 }
 0x1bd   :  { %v994_v33 = vmax.f32 %v790_v29, 0.0  ;;  %v1050_v37 = vpack.c.bf16 %v996_v30, %v995_v34  ;;  %v811_v41 = vadd.f32 %v2358_v31, %v2994_v25 }
 0x1be   :  { %v802_v35 = vpop.f32.mrf.mxu1 }
 0x1bf   :  { %v1049_v36 = vpack.c.bf16 %v994_v33, %v993_v32  ;;  %v803_v39 = vadd.f32 %v2994_v25, %v802_v35  ;;  %v999_v49 = vmax.f32 %v811_v41, 0.0 }
 0x1c0   :  { %v2359_v38 = vpop.f32.mrf.mxu1 }
 0x1c1   :  { %v814_v40 = vadd.f32 %v2359_v38, %v2994_v25  ;;  %2432 = vmatprep.mubr.bf16.mxu0 %v1049_v36  ;;  %v997_v46 = vmax.f32 %v803_v39, 0.0 }
 0x1c2   :  { %v805_v42 = vpop.f32.mrf.mxu1  ;;  %2433 = vmatmul.mubr.bf16.gmra.mxu0 %v1050_v37 }
 0x1c3   :  { %v806_v43 = vadd.f32 %v2994_v25, %v805_v42  ;;  %v1000_v44 = vmax.f32 %v814_v40, 0.0 }
 0x1c4   :  { %v2362_v45 = vpop.f32.mrf.mxu1 }
 0x1c5   :  { %v998_v48 = vmax.f32 %v806_v43, 0.0  ;;  %v1052_v52 = vpack.c.bf16 %v1000_v44, %v999_v49  ;;  %v827_v56 = vadd.f32 %v2362_v45, %v2994_v25 }
 0x1c6   :  { %v818_v50 = vpop.f32.mrf.mxu1 }
 0x1c7   :  { %v1051_v51 = vpack.c.bf16 %v998_v48, %v997_v46  ;;  %v819_v54 = vadd.f32 %v2994_v25, %v818_v50  ;;  %v1003_v63 = vmax.f32 %v827_v56, 0.0 }
 0x1c8   :  { %v2363_v53 = vpop.f32.mrf.mxu1 }
 0x1c9   :  { %v830_v55 = vadd.f32 %v2363_v53, %v2994_v25  ;;  %2436 = vmatprep.mubr.bf16.mxu0 %v1051_v51  ;;  %v1001_v61 = vmax.f32 %v819_v54, 0.0  ;;  %v2600_v51 = vld [vmem:[%s3476_s5] sm:$0xff]  }
 0x1ca   :  { %v821_v57 = vpop.f32.mrf.mxu1  ;;  %2437 = vmatmul.mubr.bf16.gmra.mxu0 %v1052_v52  ;;  %2567 = vmatprep.subr.bf16.mxu1 %v2600_v51 }
 0x1cb   :  { %v822_v58 = vadd.f32 %v2994_v25, %v821_v57  ;;  %v1004_v59 = vmax.f32 %v830_v55, 0.0  ;;  %2494 = vmatprep.subr.bf16.mxu0 %v2600_v51  ;;  %2575 = vmatpush3.bf16.msra.mxu1 %v2600_v51 }
 0x1cc   :  { %v2366_v60 = vpop.f32.mrf.mxu1  ;;  %2495 = vmatpush3.bf16.msra.mxu0 %v2600_v51 }
 0x1cd   :  { %v1002_v62 = vmax.f32 %v822_v58, 0.0  ;;  %v1054_v2 = vpack.c.bf16 %v1004_v59, %v1003_v63  ;;  %v843_v6 = vadd.f32 %v2366_v60, %v2994_v25 }
 0x1ce   :  { %v834_v0 = vpop.f32.mrf.mxu1 }
 0x1cf   :  { %v1053_v1 = vpack.c.bf16 %v1002_v62, %v1001_v61  ;;  %v835_v4 = vadd.f32 %v2994_v25, %v834_v0  ;;  %v1007_v13 = vmax.f32 %v843_v6, 0.0 }
 0x1d0   :  { %v2367_v3 = vpop.f32.mrf.mxu1 }
 0x1d1   :  { %v846_v5 = vadd.f32 %v2367_v3, %v2994_v25  ;;  %2440 = vmatprep.mubr.bf16.mxu0 %v1053_v1  ;;  %v1005_v11 = vmax.f32 %v835_v4, 0.0 }
 0x1d2   :  { %v837_v7 = vpop.f32.mrf.mxu1  ;;  %2441 = vmatmul.mubr.bf16.gmra.mxu0 %v1054_v2 }
 0x1d3   :  { %v838_v8 = vadd.f32 %v2994_v25, %v837_v7  ;;  %v1008_v9 = vmax.f32 %v846_v5, 0.0 }
 0x1d4   :  { %v2370_v10 = vpop.f32.mrf.mxu1 }
 0x1d5   :  { %v1006_v12 = vmax.f32 %v838_v8, 0.0  ;;  %v1056_v16 = vpack.c.bf16 %v1008_v9, %v1007_v13  ;;  %v859_v20 = vadd.f32 %v2370_v10, %v2994_v25 }
 0x1d6   :  { %v850_v14 = vpop.f32.mrf.mxu1 }
 0x1d7   :  { %v1055_v15 = vpack.c.bf16 %v1006_v12, %v1005_v11  ;;  %v851_v18 = vadd.f32 %v2994_v25, %v850_v14  ;;  %v1011_v27 = vmax.f32 %v859_v20, 0.0 }
 0x1d8   :  { %v2371_v17 = vpop.f32.mrf.mxu1 }
 0x1d9   :  { %v862_v19 = vadd.f32 %v2371_v17, %v2994_v25  ;;  %2444 = vmatprep.mubr.bf16.mxu0 %v1055_v15  ;;  %v1009_v24 = vmax.f32 %v851_v18, 0.0 }
 0x1da   :  { %v853_v21 = vpop.f32.mrf.mxu1  ;;  %2445 = vmatmul.mubr.bf16.gmra.mxu0 %v1056_v16 }
 0x1db   :  { %v854_v22 = vadd.f32 %v2994_v25, %v853_v21  ;;  %v1012_v23 = vmax.f32 %v862_v19, 0.0 }
 0x1dc   :  { %v2374_v47 = vpop.f32.mrf.mxu1 }
 0x1dd   :  { %v1010_v26 = vmax.f32 %v854_v22, 0.0  ;;  %v1058_v30 = vpack.c.bf16 %v1012_v23, %v1011_v27  ;;  %v875_v34 = vadd.f32 %v2374_v47, %v2994_v25 }
 0x1de   :  { %v866_v28 = vpop.f32.mrf.mxu1 }
 0x1df   :  { %v1057_v29 = vpack.c.bf16 %v1010_v26, %v1009_v24  ;;  %v867_v32 = vadd.f32 %v2994_v25, %v866_v28  ;;  %v1015_v41 = vmax.f32 %v875_v34, 0.0 }
 0x1e0   :  { %v2375_v31 = vpop.f32.mrf.mxu1 }
 0x1e1   :  { %v878_v33 = vadd.f32 %v2375_v31, %v2994_v25  ;;  %2448 = vmatprep.mubr.bf16.mxu0 %v1057_v29  ;;  %v1013_v39 = vmax.f32 %v867_v32, 0.0 }
 0x1e2   :  { %v869_v35 = vpop.f32.mrf.mxu1  ;;  %2449 = vmatmul.mubr.bf16.gmra.mxu0 %v1058_v30 }
 0x1e3   :  { %v870_v36 = vadd.f32 %v2994_v25, %v869_v35  ;;  %v1016_v37 = vmax.f32 %v878_v33, 0.0 }
 0x1e4   :  { %v2378_v38 = vpop.f32.mrf.mxu1 }
 0x1e5   :  { %v1014_v40 = vmax.f32 %v870_v36, 0.0  ;;  %v1060_v44 = vpack.c.bf16 %v1016_v37, %v1015_v41  ;;  %v891_v49 = vadd.f32 %v2378_v38, %v2994_v25 }
 0x1e6   :  { %v882_v42 = vpop.f32.mrf.mxu1 }
 0x1e7   :  { %v1059_v43 = vpack.c.bf16 %v1014_v40, %v1013_v39  ;;  %v883_v46 = vadd.f32 %v2994_v25, %v882_v42  ;;  %v1019_v57 = vmax.f32 %v891_v49, 0.0 }
 0x1e8   :  { %v2379_v45 = vpop.f32.mrf.mxu1 }
 0x1e9   :  { %v894_v48 = vadd.f32 %v2379_v45, %v2994_v25  ;;  %2452 = vmatprep.mubr.bf16.mxu0 %v1059_v43  ;;  %v1017_v55 = vmax.f32 %v883_v46, 0.0 }
 0x1ea   :  { %v885_v50 = vpop.f32.mrf.mxu1  ;;  %2453 = vmatmul.mubr.bf16.gmra.mxu0 %v1060_v44 }
 0x1eb   :  { %v886_v52 = vadd.f32 %v2994_v25, %v885_v50  ;;  %v1020_v53 = vmax.f32 %v894_v48, 0.0 }
 0x1ec   :  { %v2382_v54 = vpop.f32.mrf.mxu1 }
 0x1ed   :  { %v1018_v56 = vmax.f32 %v886_v52, 0.0  ;;  %v1062_v60 = vpack.c.bf16 %v1020_v53, %v1019_v57  ;;  %v907_v0 = vadd.f32 %v2382_v54, %v2994_v25 }
 0x1ee   :  { %v898_v58 = vpop.f32.mrf.mxu1 }
 0x1ef   :  { %v1061_v59 = vpack.c.bf16 %v1018_v56, %v1017_v55  ;;  %v899_v62 = vadd.f32 %v2994_v25, %v898_v58  ;;  %v1023_v7 = vmax.f32 %v907_v0, 0.0 }
 0x1f0   :  { %v2383_v61 = vpop.f32.mrf.mxu1 }
 0x1f1   :  { %v910_v63 = vadd.f32 %v2383_v61, %v2994_v25  ;;  %2456 = vmatprep.mubr.bf16.mxu0 %v1061_v59  ;;  %v1021_v5 = vmax.f32 %v899_v62, 0.0 }
 0x1f2   :  { %v901_v1 = vpop.f32.mrf.mxu1  ;;  %2457 = vmatmul.mubr.bf16.gmra.mxu0 %v1062_v60 }
 0x1f3   :  { %v902_v2 = vadd.f32 %v2994_v25, %v901_v1  ;;  %v1024_v3 = vmax.f32 %v910_v63, 0.0 }
 0x1f4   :  { %v2386_v4 = vpop.f32.mrf.mxu1 }
 0x1f5   :  { %v1022_v6 = vmax.f32 %v902_v2, 0.0  ;;  %v1064_v10 = vpack.c.bf16 %v1024_v3, %v1023_v7  ;;  %v923_v14 = vadd.f32 %v2386_v4, %v2994_v25  ;;  %v3081_v4 = vld [vmem:[%s3477_s4 + $0x1] ss:$0 sm:$0xff] }
 0x1f6   :  { %v914_v8 = vpop.f32.mrf.mxu1 }
 0x1f7   :  { %v1063_v9 = vpack.c.bf16 %v1022_v6, %v1021_v5  ;;  %v915_v12 = vadd.f32 %v2994_v25, %v914_v8  ;;  %v1027_v21 = vmax.f32 %v923_v14, 0.0 }
 0x1f8   :  { %v2387_v11 = vpop.f32.mrf.mxu1 }
 0x1f9   :  { %v926_v13 = vadd.f32 %v2387_v11, %v2994_v25  ;;  %2460 = vmatprep.mubr.bf16.mxu0 %v1063_v9  ;;  %v1025_v19 = vmax.f32 %v915_v12, 0.0 }
 0x1fa   :  { %v917_v15 = vpop.f32.mrf.mxu1  ;;  %2461 = vmatmul.mubr.bf16.gmra.mxu0 %v1064_v10 }
 0x1fb   :  { %v918_v16 = vadd.f32 %v2994_v25, %v917_v15  ;;  %v1028_v17 = vmax.f32 %v926_v13, 0.0 }
 0x1fc   :  { %v2390_v18 = vpop.f32.mrf.mxu1 }
 0x1fd   :  { %v1026_v20 = vmax.f32 %v918_v16, 0.0  ;;  %v1066_v47 = vpack.c.bf16 %v1028_v17, %v1027_v21  ;;  %v939_v28 = vadd.f32 %v2390_v18, %v2994_v25 }
 0x1fe   :  { %v930_v22 = vpop.f32.mrf.mxu1 }
 0x1ff   :  { %v1065_v23 = vpack.c.bf16 %v1026_v20, %v1025_v19  ;;  %v931_v26 = vadd.f32 %v2994_v25, %v930_v22  ;;  %v1031_v35 = vmax.f32 %v939_v28, 0.0 }
 0x200   :  { %v2391_v24 = vpop.f32.mrf.mxu1 }
 0x201   :  { %v942_v27 = vadd.f32 %v2391_v24, %v2994_v25  ;;  %2464 = vmatprep.mubr.bf16.mxu0 %v1065_v23  ;;  %v1029_v33 = vmax.f32 %v931_v26, 0.0 }
 0x202   :  { %v933_v29 = vpop.f32.mrf.mxu1  ;;  %2465 = vmatmul.mubr.bf16.gmra.mxu0 %v1066_v47 }
 0x203   :  { %v934_v30 = vadd.f32 %v2994_v25, %v933_v29  ;;  %v1032_v31 = vmax.f32 %v942_v27, 0.0 }
 0x204   :  { %v2394_v32 = vpop.f32.mrf.mxu1 }
 0x205   :  { %v1030_v34 = vmax.f32 %v934_v30, 0.0  ;;  %v1068_v38 = vpack.c.bf16 %v1032_v31, %v1031_v35  ;;  %v955_v42 = vadd.f32 %v2394_v32, %v2994_v25 }
 0x206   :  { %v946_v36 = vpop.f32.mrf.mxu1 }
 0x207   :  { %v1067_v37 = vpack.c.bf16 %v1030_v34, %v1029_v33  ;;  %v947_v40 = vadd.f32 %v2994_v25, %v946_v36  ;;  %v1035_v50 = vmax.f32 %v955_v42, 0.0 }
 0x208   :  { %v2395_v39 = vpop.f32.mrf.mxu1 }
 0x209   :  { %v958_v41 = vadd.f32 %v2395_v39, %v2994_v25  ;;  %2468 = vmatprep.mubr.bf16.mxu0 %v1067_v37  ;;  %v1033_v48 = vmax.f32 %v947_v40, 0.0 }
 0x20a   :  { %v949_v43 = vpop.f32.mrf.mxu1  ;;  %2469 = vmatmul.mubr.bf16.gmra.mxu0 %v1068_v38 }
 0x20b   :  { %v950_v44 = vadd.f32 %v2994_v25, %v949_v43  ;;  %v1036_v45 = vmax.f32 %v958_v41, 0.0 }
 0x20c   :  { %v2398_v46 = vpop.f32.mrf.mxu1 }
 0x20d   :  { %v1034_v49 = vmax.f32 %v950_v44, 0.0  ;;  %v1070_v53 = vpack.c.bf16 %v1036_v45, %v1035_v50  ;;  %v971_v57 = vadd.f32 %v2398_v46, %v2994_v25 }
 0x20e   :  { %v962_v51 = vpop.f32.mrf.mxu1 }
 0x20f   :  { %v1069_v52 = vpack.c.bf16 %v1034_v49, %v1033_v48  ;;  %v963_v55 = vadd.f32 %v2994_v25, %v962_v51  ;;  %v1039_v63 = vmax.f32 %v971_v57, 0.0 }
 0x210   :  { %v2399_v54 = vpop.f32.mrf.mxu1 }
 0x211   :  { %v974_v56 = vadd.f32 %v2399_v54, %v2994_v25  ;;  %2472 = vmatprep.mubr.bf16.mxu0 %v1069_v52  ;;  %v1037_v61 = vmax.f32 %v963_v55, 0.0 }
 0x212   :  { %v965_v58 = vpop.f32.mrf.mxu1  ;;  %2473 = vmatmul.mubr.bf16.gmra.mxu0 %v1070_v53 }
 0x213   :  { %v966_v59 = vadd.f32 %v2994_v25, %v965_v58  ;;  %v1040_v60 = vmax.f32 %v974_v56, 0.0 }
 0x215   :  { %v1038_v62 = vmax.f32 %v966_v59, 0.0  ;;  %v1072_v1 = vpack.c.bf16 %v1040_v60, %v1039_v63 }
 0x217   :  { %v1071_v0 = vpack.c.bf16 %v1038_v62, %v1037_v61 }
 0x219   :  { %2476 = vmatprep.mubr.bf16.mxu0 %v1071_v0 }
 0x21a   :  { %2477 = vmatmul.mubr.bf16.gmra.mxu0 %v1072_v1 }
 0x262   :  { %v2418_v2 = vpop.f32.mrf.mxu0 }
 0x263   :  { %v1189_v7 = vadd.f32 %v2418_v2, %v3081_v4 }
 0x264   :  { %v1180_v3 = vpop.f32.mrf.mxu0 }
 0x265   :  { %v1181_v6 = vadd.f32 %v3081_v4, %v1180_v3  ;;  %v1437_v14 = vmax.f32 %v1189_v7, 0.0 }
 0x266   :  { %v2419_v5 = vpop.f32.mrf.mxu0 }
 0x267   :  { %v1192_v25 = vadd.f32 %v2419_v5, %v3081_v4  ;;  %v1435_v12 = vmax.f32 %v1181_v6, 0.0 }
 0x268   :  { %v1183_v8 = vpop.f32.mrf.mxu0 }
 0x269   :  { %v1184_v9 = vadd.f32 %v3081_v4, %v1183_v8  ;;  %v1438_v10 = vmax.f32 %v1192_v25, 0.0 }
 0x26a   :  { %v2422_v11 = vpop.f32.mrf.mxu0 }
 0x26b   :  { %v1436_v13 = vmax.f32 %v1184_v9, 0.0  ;;  %v1500_v17 = vpack.c.bf16 %v1438_v10, %v1437_v14  ;;  %v1205_v21 = vadd.f32 %v2422_v11, %v3081_v4 }
 0x26c   :  { %v1196_v15 = vpop.f32.mrf.mxu0 }
 0x26d   :  { %v1499_v16 = vpack.c.bf16 %v1436_v13, %v1435_v12  ;;  %v1197_v19 = vadd.f32 %v3081_v4, %v1196_v15  ;;  %v1441_v28 = vmax.f32 %v1205_v21, 0.0 }
 0x26e   :  { %v2423_v18 = vpop.f32.mrf.mxu0 }
 0x26f   :  { %v1208_v20 = vadd.f32 %v2423_v18, %v3081_v4  ;;  %2496 = vmatprep.mubr.bf16.mxu0 %v1499_v16  ;;  %v1439_v26 = vmax.f32 %v1197_v19, 0.0 }
 0x270   :  { %v1199_v22 = vpop.f32.mrf.mxu0  ;;  %2497 = vmatmul.mubr.bf16.vlgmr.msra.gmra.mxu0 %v1500_v17 }
 0x271   :  { %v1200_v23 = vadd.f32 %v3081_v4, %v1199_v22  ;;  %v1442_v47 = vmax.f32 %v1208_v20, 0.0 }
 0x272   :  { %v2426_v24 = vpop.f32.mrf.mxu0 }
 0x273   :  { %v1440_v27 = vmax.f32 %v1200_v23, 0.0  ;;  %v1502_v31 = vpack.c.bf16 %v1442_v47, %v1441_v28  ;;  %v1221_v35 = vadd.f32 %v2426_v24, %v3081_v4 }
 0x274   :  { %v1212_v29 = vpop.f32.mrf.mxu0 }
 0x275   :  { %v1501_v30 = vpack.c.bf16 %v1440_v27, %v1439_v26  ;;  %v1213_v33 = vadd.f32 %v3081_v4, %v1212_v29  ;;  %v1445_v42 = vmax.f32 %v1221_v35, 0.0 }
 0x276   :  { %v2427_v32 = vpop.f32.mrf.mxu0 }
 0x277   :  { %v1224_v34 = vadd.f32 %v2427_v32, %v3081_v4  ;;  %2500 = vmatprep.mubr.bf16.mxu1 %v1501_v30  ;;  %v1443_v40 = vmax.f32 %v1213_v33, 0.0 }
 0x278   :  { %v1215_v36 = vpop.f32.mrf.mxu0  ;;  %2501 = vmatmul.mubr.bf16.vlgmr.msra.gmra.mxu1 %v1502_v31 }
 0x279   :  { %v1216_v37 = vadd.f32 %v3081_v4, %v1215_v36  ;;  %v1446_v38 = vmax.f32 %v1224_v34, 0.0 }
 0x27a   :  { %v2430_v39 = vpop.f32.mrf.mxu0 }
 0x27b   :  { %v1444_v41 = vmax.f32 %v1216_v37, 0.0  ;;  %v1504_v45 = vpack.c.bf16 %v1446_v38, %v1445_v42  ;;  %v1237_v50 = vadd.f32 %v2430_v39, %v3081_v4 }
 0x27c   :  { %v1228_v43 = vpop.f32.mrf.mxu0 }
 0x27d   :  { %v1503_v44 = vpack.c.bf16 %v1444_v41, %v1443_v40  ;;  %v1229_v48 = vadd.f32 %v3081_v4, %v1228_v43  ;;  %v1449_v57 = vmax.f32 %v1237_v50, 0.0 }
 0x27e   :  { %v2431_v46 = vpop.f32.mrf.mxu0 }
 0x27f   :  { %v1240_v49 = vadd.f32 %v2431_v46, %v3081_v4  ;;  %2504 = vmatprep.mubr.bf16.mxu1 %v1503_v44  ;;  %v1447_v55 = vmax.f32 %v1229_v48, 0.0 }
 0x280   :  { %v1231_v51 = vpop.f32.mrf.mxu0  ;;  %2505 = vmatmul.mubr.bf16.gmra.mxu1 %v1504_v45 }
 0x281   :  { %v1232_v52 = vadd.f32 %v3081_v4, %v1231_v51  ;;  %v1450_v53 = vmax.f32 %v1240_v49, 0.0 }
 0x282   :  { %v2434_v54 = vpop.f32.mrf.mxu0 }
 0x283   :  { %v1448_v56 = vmax.f32 %v1232_v52, 0.0  ;;  %v1506_v60 = vpack.c.bf16 %v1450_v53, %v1449_v57  ;;  %v1253_v0 = vadd.f32 %v2434_v54, %v3081_v4 }
 0x284   :  { %v1244_v58 = vpop.f32.mrf.mxu0 }
 0x285   :  { %v1505_v59 = vpack.c.bf16 %v1448_v56, %v1447_v55  ;;  %v1245_v62 = vadd.f32 %v3081_v4, %v1244_v58  ;;  %v1453_v7 = vmax.f32 %v1253_v0, 0.0 }
 0x286   :  { %v2435_v61 = vpop.f32.mrf.mxu0 }
 0x287   :  { %v1256_v63 = vadd.f32 %v2435_v61, %v3081_v4  ;;  %2508 = vmatprep.mubr.bf16.mxu1 %v1505_v59  ;;  %v1451_v6 = vmax.f32 %v1245_v62, 0.0 }
 0x288   :  { %v1247_v1 = vpop.f32.mrf.mxu0  ;;  %2509 = vmatmul.mubr.bf16.gmra.mxu1 %v1506_v60 }
 0x289   :  { %v1248_v2 = vadd.f32 %v3081_v4, %v1247_v1  ;;  %v1454_v3 = vmax.f32 %v1256_v63, 0.0 }
 0x28a   :  { %v2438_v5 = vpop.f32.mrf.mxu0 }
 0x28b   :  { %v1452_v25 = vmax.f32 %v1248_v2, 0.0  ;;  %v1508_v10 = vpack.c.bf16 %v1454_v3, %v1453_v7  ;;  %v1269_v14 = vadd.f32 %v2438_v5, %v3081_v4 }
 0x28c   :  { %v1260_v8 = vpop.f32.mrf.mxu0 }
 0x28d   :  { %v1507_v9 = vpack.c.bf16 %v1452_v25, %v1451_v6  ;;  %v1261_v12 = vadd.f32 %v3081_v4, %v1260_v8  ;;  %v1457_v21 = vmax.f32 %v1269_v14, 0.0 }
 0x28e   :  { %v2439_v11 = vpop.f32.mrf.mxu0 }
 0x28f   :  { %v1272_v13 = vadd.f32 %v2439_v11, %v3081_v4  ;;  %2512 = vmatprep.mubr.bf16.mxu1 %v1507_v9  ;;  %v1455_v19 = vmax.f32 %v1261_v12, 0.0 }
 0x290   :  { %v1263_v15 = vpop.f32.mrf.mxu0  ;;  %2513 = vmatmul.mubr.bf16.gmra.mxu1 %v1508_v10 }
 0x291   :  { %v1264_v16 = vadd.f32 %v3081_v4, %v1263_v15  ;;  %v1458_v17 = vmax.f32 %v1272_v13, 0.0 }
 0x292   :  { %v2442_v18 = vpop.f32.mrf.mxu0 }
 0x293   :  { %v1456_v20 = vmax.f32 %v1264_v16, 0.0  ;;  %v1510_v47 = vpack.c.bf16 %v1458_v17, %v1457_v21  ;;  %v1285_v28 = vadd.f32 %v2442_v18, %v3081_v4 }
 0x294   :  { %v1276_v22 = vpop.f32.mrf.mxu0 }
 0x295   :  { %v1509_v23 = vpack.c.bf16 %v1456_v20, %v1455_v19  ;;  %v1277_v26 = vadd.f32 %v3081_v4, %v1276_v22  ;;  %v1461_v35 = vmax.f32 %v1285_v28, 0.0 }
 0x296   :  { %v2443_v24 = vpop.f32.mrf.mxu0 }
 0x297   :  { %v1288_v27 = vadd.f32 %v2443_v24, %v3081_v4  ;;  %2516 = vmatprep.mubr.bf16.mxu1 %v1509_v23  ;;  %v1459_v33 = vmax.f32 %v1277_v26, 0.0 }
 0x298   :  { %v1279_v29 = vpop.f32.mrf.mxu0  ;;  %2517 = vmatmul.mubr.bf16.gmra.mxu1 %v1510_v47 }
 0x299   :  { %v1280_v30 = vadd.f32 %v3081_v4, %v1279_v29  ;;  %v1462_v31 = vmax.f32 %v1288_v27, 0.0 }
 0x29a   :  { %v2446_v32 = vpop.f32.mrf.mxu0 }
 0x29b   :  { %v1460_v34 = vmax.f32 %v1280_v30, 0.0  ;;  %v1512_v38 = vpack.c.bf16 %v1462_v31, %v1461_v35  ;;  %v1301_v42 = vadd.f32 %v2446_v32, %v3081_v4 }
 0x29c   :  { %v1292_v36 = vpop.f32.mrf.mxu0 }
 0x29d   :  { %v1511_v37 = vpack.c.bf16 %v1460_v34, %v1459_v33  ;;  %v1293_v40 = vadd.f32 %v3081_v4, %v1292_v36  ;;  %v1465_v50 = vmax.f32 %v1301_v42, 0.0 }
 0x29e   :  { %v2447_v39 = vpop.f32.mrf.mxu0 }
 0x29f   :  { %v1304_v41 = vadd.f32 %v2447_v39, %v3081_v4  ;;  %2520 = vmatprep.mubr.bf16.mxu1 %v1511_v37  ;;  %v1463_v48 = vmax.f32 %v1293_v40, 0.0 }
 0x2a0   :  { %v1295_v43 = vpop.f32.mrf.mxu0  ;;  %2521 = vmatmul.mubr.bf16.gmra.mxu1 %v1512_v38 }
 0x2a1   :  { %v1296_v44 = vadd.f32 %v3081_v4, %v1295_v43  ;;  %v1466_v45 = vmax.f32 %v1304_v41, 0.0 }
 0x2a2   :  { %v2450_v46 = vpop.f32.mrf.mxu0 }
 0x2a3   :  { %v1464_v49 = vmax.f32 %v1296_v44, 0.0  ;;  %v1514_v53 = vpack.c.bf16 %v1466_v45, %v1465_v50  ;;  %v1317_v57 = vadd.f32 %v2450_v46, %v3081_v4 }
 0x2a4   :  { %v1308_v51 = vpop.f32.mrf.mxu0 }
 0x2a5   :  { %v1513_v52 = vpack.c.bf16 %v1464_v49, %v1463_v48  ;;  %v1309_v55 = vadd.f32 %v3081_v4, %v1308_v51  ;;  %v1469_v0 = vmax.f32 %v1317_v57, 0.0 }
 0x2a6   :  { %v2451_v54 = vpop.f32.mrf.mxu0 }
 0x2a7   :  { %v1320_v56 = vadd.f32 %v2451_v54, %v3081_v4  ;;  %2524 = vmatprep.mubr.bf16.mxu1 %v1513_v52  ;;  %v1467_v62 = vmax.f32 %v1309_v55, 0.0 }
 0x2a8   :  { %v1311_v58 = vpop.f32.mrf.mxu0  ;;  %2525 = vmatmul.mubr.bf16.gmra.mxu1 %v1514_v53 }
 0x2a9   :  { %v1312_v59 = vadd.f32 %v3081_v4, %v1311_v58  ;;  %v1470_v60 = vmax.f32 %v1320_v56, 0.0 }
 0x2aa   :  { %v2454_v61 = vpop.f32.mrf.mxu0 }
 0x2ab   :  { %v1468_v63 = vmax.f32 %v1312_v59, 0.0  ;;  %v1516_v3 = vpack.c.bf16 %v1470_v60, %v1469_v0  ;;  %v1333_v7 = vadd.f32 %v2454_v61, %v3081_v4 }
 0x2ac   :  { %v1324_v1 = vpop.f32.mrf.mxu0 }
 0x2ad   :  { %v1515_v2 = vpack.c.bf16 %v1468_v63, %v1467_v62  ;;  %v1325_v6 = vadd.f32 %v3081_v4, %v1324_v1  ;;  %v1473_v14 = vmax.f32 %v1333_v7, 0.0 }
 0x2ae   :  { %v2455_v5 = vpop.f32.mrf.mxu0 }
 0x2af   :  { %v1336_v25 = vadd.f32 %v2455_v5, %v3081_v4  ;;  %2528 = vmatprep.mubr.bf16.mxu1 %v1515_v2  ;;  %v1471_v12 = vmax.f32 %v1325_v6, 0.0 }
 0x2b0   :  { %v1327_v8 = vpop.f32.mrf.mxu0  ;;  %2529 = vmatmul.mubr.bf16.gmra.mxu1 %v1516_v3 }
 0x2b1   :  { %v1328_v9 = vadd.f32 %v3081_v4, %v1327_v8  ;;  %v1474_v10 = vmax.f32 %v1336_v25, 0.0 }
 0x2b2   :  { %v2458_v11 = vpop.f32.mrf.mxu0 }
 0x2b3   :  { %v1472_v13 = vmax.f32 %v1328_v9, 0.0  ;;  %v1518_v17 = vpack.c.bf16 %v1474_v10, %v1473_v14  ;;  %v1349_v21 = vadd.f32 %v2458_v11, %v3081_v4 }
 0x2b4   :  { %v1340_v15 = vpop.f32.mrf.mxu0 }
 0x2b5   :  { %v1517_v16 = vpack.c.bf16 %v1472_v13, %v1471_v12  ;;  %v1341_v19 = vadd.f32 %v3081_v4, %v1340_v15  ;;  %v1477_v28 = vmax.f32 %v1349_v21, 0.0 }
 0x2b6   :  { %v2459_v18 = vpop.f32.mrf.mxu0 }
 0x2b7   :  { %v1352_v20 = vadd.f32 %v2459_v18, %v3081_v4  ;;  %2532 = vmatprep.mubr.bf16.mxu1 %v1517_v16  ;;  %v1475_v26 = vmax.f32 %v1341_v19, 0.0 }
 0x2b8   :  { %v1343_v22 = vpop.f32.mrf.mxu0  ;;  %2533 = vmatmul.mubr.bf16.gmra.mxu1 %v1518_v17 }
 0x2b9   :  { %v1344_v23 = vadd.f32 %v3081_v4, %v1343_v22  ;;  %v1478_v47 = vmax.f32 %v1352_v20, 0.0 }
 0x2ba   :  { %v2462_v24 = vpop.f32.mrf.mxu0 }
 0x2bb   :  { %v1476_v27 = vmax.f32 %v1344_v23, 0.0  ;;  %v1520_v31 = vpack.c.bf16 %v1478_v47, %v1477_v28  ;;  %v1365_v35 = vadd.f32 %v2462_v24, %v3081_v4 }
 0x2bc   :  { %v1356_v29 = vpop.f32.mrf.mxu0 }
 0x2bd   :  { %v1519_v30 = vpack.c.bf16 %v1476_v27, %v1475_v26  ;;  %v1357_v33 = vadd.f32 %v3081_v4, %v1356_v29  ;;  %v1481_v42 = vmax.f32 %v1365_v35, 0.0 }
 0x2be   :  { %v2463_v32 = vpop.f32.mrf.mxu0 }
 0x2bf   :  { %v1368_v34 = vadd.f32 %v2463_v32, %v3081_v4  ;;  %2536 = vmatprep.mubr.bf16.mxu1 %v1519_v30  ;;  %v1479_v40 = vmax.f32 %v1357_v33, 0.0 }
 0x2c0   :  { %v1359_v36 = vpop.f32.mrf.mxu0  ;;  %2537 = vmatmul.mubr.bf16.gmra.mxu1 %v1520_v31 }
 0x2c1   :  { %v1360_v37 = vadd.f32 %v3081_v4, %v1359_v36  ;;  %v1482_v38 = vmax.f32 %v1368_v34, 0.0 }
 0x2c2   :  { %v2466_v39 = vpop.f32.mrf.mxu0 }
 0x2c3   :  { %v1480_v41 = vmax.f32 %v1360_v37, 0.0  ;;  %v1522_v45 = vpack.c.bf16 %v1482_v38, %v1481_v42  ;;  %v1381_v50 = vadd.f32 %v2466_v39, %v3081_v4  ;;  %v3150_v37 = vld [vmem:[%s3478_s6] ss:$0 sm:$0xff] }
 0x2c4   :  { %v1372_v43 = vpop.f32.mrf.mxu0 }
 0x2c5   :  { %v1521_v44 = vpack.c.bf16 %v1480_v41, %v1479_v40  ;;  %v1373_v48 = vadd.f32 %v3081_v4, %v1372_v43  ;;  %v1485_v57 = vmax.f32 %v1381_v50, 0.0 }
 0x2c6   :  { %v2467_v46 = vpop.f32.mrf.mxu0 }
 0x2c7   :  { %v1384_v49 = vadd.f32 %v2467_v46, %v3081_v4  ;;  %2540 = vmatprep.mubr.bf16.mxu1 %v1521_v44  ;;  %v1483_v55 = vmax.f32 %v1373_v48, 0.0 }
 0x2c8   :  { %v1375_v51 = vpop.f32.mrf.mxu0  ;;  %2541 = vmatmul.mubr.bf16.gmra.mxu1 %v1522_v45 }
 0x2c9   :  { %v1376_v52 = vadd.f32 %v3081_v4, %v1375_v51  ;;  %v1486_v53 = vmax.f32 %v1384_v49, 0.0 }
 0x2ca   :  { %v2470_v54 = vpop.f32.mrf.mxu0 }
 0x2cb   :  { %v1484_v56 = vmax.f32 %v1376_v52, 0.0  ;;  %v1524_v60 = vpack.c.bf16 %v1486_v53, %v1485_v57  ;;  %v1397_v0 = vadd.f32 %v2470_v54, %v3081_v4 }
 0x2cc   :  { %v1388_v58 = vpop.f32.mrf.mxu0 }
 0x2cd   :  { %v1523_v59 = vpack.c.bf16 %v1484_v56, %v1483_v55  ;;  %v1389_v62 = vadd.f32 %v3081_v4, %v1388_v58  ;;  %v1489_v7 = vmax.f32 %v1397_v0, 0.0 }
 0x2ce   :  { %v2471_v61 = vpop.f32.mrf.mxu0 }
 0x2cf   :  { %v1400_v63 = vadd.f32 %v2471_v61, %v3081_v4  ;;  %2544 = vmatprep.mubr.bf16.mxu1 %v1523_v59  ;;  %v1487_v6 = vmax.f32 %v1389_v62, 0.0 }
 0x2d0   :  { %v1391_v1 = vpop.f32.mrf.mxu0  ;;  %2545 = vmatmul.mubr.bf16.gmra.mxu1 %v1524_v60 }
 0x2d1   :  { %v1392_v2 = vadd.f32 %v3081_v4, %v1391_v1  ;;  %v1490_v3 = vmax.f32 %v1400_v63, 0.0 }
 0x2d2   :  { %v2474_v5 = vpop.f32.mrf.mxu0 }
 0x2d3   :  { %v1488_v25 = vmax.f32 %v1392_v2, 0.0  ;;  %v1526_v10 = vpack.c.bf16 %v1490_v3, %v1489_v7  ;;  %v1413_v14 = vadd.f32 %v2474_v5, %v3081_v4 }
 0x2d4   :  { %v1404_v8 = vpop.f32.mrf.mxu0 }
 0x2d5   :  { %v1525_v9 = vpack.c.bf16 %v1488_v25, %v1487_v6  ;;  %v1405_v12 = vadd.f32 %v3081_v4, %v1404_v8  ;;  %v1493_v21 = vmax.f32 %v1413_v14, 0.0 }
 0x2d6   :  { %v2475_v11 = vpop.f32.mrf.mxu0 }
 0x2d7   :  { %v1416_v13 = vadd.f32 %v2475_v11, %v3081_v4  ;;  %2548 = vmatprep.mubr.bf16.mxu1 %v1525_v9  ;;  %v1491_v19 = vmax.f32 %v1405_v12, 0.0 }
 0x2d8   :  { %v1407_v15 = vpop.f32.mrf.mxu0  ;;  %2549 = vmatmul.mubr.bf16.gmra.mxu1 %v1526_v10 }
 0x2d9   :  { %v1408_v16 = vadd.f32 %v3081_v4, %v1407_v15  ;;  %v1494_v17 = vmax.f32 %v1416_v13, 0.0 }
 0x2da   :  { %v2478_v18 = vpop.f32.mrf.mxu0 }
 0x2db   :  { %v1492_v20 = vmax.f32 %v1408_v16, 0.0  ;;  %v1528_v47 = vpack.c.bf16 %v1494_v17, %v1493_v21  ;;  %v1429_v28 = vadd.f32 %v2478_v18, %v3081_v4 }
 0x2dc   :  { %v1420_v22 = vpop.f32.mrf.mxu0 }
 0x2dd   :  { %v1527_v23 = vpack.c.bf16 %v1492_v20, %v1491_v19  ;;  %v1421_v26 = vadd.f32 %v3081_v4, %v1420_v22  ;;  %v1497_v34 = vmax.f32 %v1429_v28, 0.0 }
 0x2de   :  { %v2479_v24 = vpop.f32.mrf.mxu0 }
 0x2df   :  { %v1432_v27 = vadd.f32 %v2479_v24, %v3081_v4  ;;  %2552 = vmatprep.mubr.bf16.mxu1 %v1527_v23  ;;  %v1495_v32 = vmax.f32 %v1421_v26, 0.0 }
 0x2e0   :  { %v1423_v29 = vpop.f32.mrf.mxu0  ;;  %2553 = vmatmul.mubr.bf16.gmra.mxu1 %v1528_v47 }
 0x2e1   :  { %v1424_v30 = vadd.f32 %v3081_v4, %v1423_v29  ;;  %v1498_v31 = vmax.f32 %v1432_v27, 0.0 }
 0x2e3   :  { %v1496_v33 = vmax.f32 %v1424_v30, 0.0  ;;  %v1530_v36 = vpack.c.bf16 %v1498_v31, %v1497_v34 }
 0x2e5   :  { %v1529_v35 = vpack.c.bf16 %v1496_v33, %v1495_v32 }
 0x2e7   :  { %2556 = vmatprep.mubr.bf16.mxu1 %v1529_v35 }
 0x2e8   :  { %2557 = vmatmul.mubr.bf16.gmra.mxu1 %v1530_v36 }
 0x330   :  { %v2498_v38 = vpop.f32.mrf.mxu0 }
 0x331   :  { %v1893_v39 = vadd.f32 %v2498_v38, %v3150_v37 }
 0x332   :  { %v1629_v40 = vpop.f32.mrf.mxu0 }
 0x333   :  { %1958 = vst.msk [vmem:[%s3479_s7 + $0x10] sm:$0xff] %vm1955_vm2, %v1893_v39  ;;  %v1891_v4 = vadd.f32 %v3150_v37, %v1629_v40 }
 0x334   :  { %v2499_v41 = vpop.f32.mrf.mxu0 }
 0x335   :  { %1956 = vst.msk [vmem:[%s3479_s7] sm:$0xff] %vm1955_vm2, %v1891_v4  ;;  %v1894_v42 = vadd.f32 %v2499_v41, %v3150_v37 }
 0x336   :  { %v1632_v43 = vpop.f32.mrf.mxu0 }
 0x337   :  { %1959 = vst.msk [vmem:[%s3479_s7 + $0x18] sm:$0xff] %vm1955_vm2, %v1894_v42  ;;  %v1892_v44 = vadd.f32 %v3150_v37, %v1632_v43 }
 0x338   :  { %v2502_v45 = vpop.f32.mrf.mxu1 }
 0x339   :  { %1957 = vst.msk [vmem:[%s3479_s7 + $0x8] sm:$0xff] %vm1955_vm2, %v1892_v44  ;;  %v1897_v46 = vadd.f32 %v2502_v45, %v3150_v37 }
 0x33a   :  { %v1645_v48 = vpop.f32.mrf.mxu1 }
 0x33b   :  { %1962 = vst.msk [vmem:[%s3479_s7 + $0x30] sm:$0xff] %vm1955_vm2, %v1897_v46  ;;  %v1895_v49 = vadd.f32 %v3150_v37, %v1645_v48 }
 0x33c   :  { %v2503_v50 = vpop.f32.mrf.mxu1 }
 0x33d   :  { %1960 = vst.msk [vmem:[%s3479_s7 + $0x20] sm:$0xff] %vm1955_vm2, %v1895_v49  ;;  %v1898_v51 = vadd.f32 %v2503_v50, %v3150_v37 }
 0x33e   :  { %v1648_v52 = vpop.f32.mrf.mxu1 }
 0x33f   :  { %1963 = vst.msk [vmem:[%s3479_s7 + $0x38] sm:$0xff] %vm1955_vm2, %v1898_v51  ;;  %v1896_v53 = vadd.f32 %v3150_v37, %v1648_v52 }
 0x340   :  { %v2506_v54 = vpop.f32.mrf.mxu1 }
 0x341   :  { %1961 = vst.msk [vmem:[%s3479_s7 + $0x28] sm:$0xff] %vm1955_vm2, %v1896_v53  ;;  %v1901_v55 = vadd.f32 %v2506_v54, %v3150_v37 }
 0x342   :  { %v1661_v56 = vpop.f32.mrf.mxu1 }
 0x343   :  { %1966 = vst.msk [vmem:[%s3479_s7 + $0x50] sm:$0xff] %vm1955_vm2, %v1901_v55  ;;  %v1899_v57 = vadd.f32 %v3150_v37, %v1661_v56 }
 0x344   :  { %v2507_v58 = vpop.f32.mrf.mxu1 }
 0x345   :  { %1964 = vst.msk [vmem:[%s3479_s7 + $0x40] sm:$0xff] %vm1955_vm2, %v1899_v57  ;;  %v1902_v59 = vadd.f32 %v2507_v58, %v3150_v37 }
 0x346   :  { %v1664_v60 = vpop.f32.mrf.mxu1 }
 0x347   :  { %1967 = vst.msk [vmem:[%s3479_s7 + $0x58] sm:$0xff] %vm1955_vm2, %v1902_v59  ;;  %v1900_v61 = vadd.f32 %v3150_v37, %v1664_v60 }
 0x348   :  { %v2510_v62 = vpop.f32.mrf.mxu1 }
 0x349   :  { %1965 = vst.msk [vmem:[%s3479_s7 + $0x48] sm:$0xff] %vm1955_vm2, %v1900_v61  ;;  %v1905_v63 = vadd.f32 %v2510_v62, %v3150_v37 }
 0x34a   :  { %v1677_v0 = vpop.f32.mrf.mxu1 }
 0x34b   :  { %1970 = vst.msk [vmem:[%s3479_s7 + $0x70] sm:$0xff] %vm1955_vm2, %v1905_v63  ;;  %v1903_v1 = vadd.f32 %v3150_v37, %v1677_v0 }
 0x34c   :  { %v2511_v2 = vpop.f32.mrf.mxu1 }
 0x34d   :  { %1968 = vst.msk [vmem:[%s3479_s7 + $0x60] sm:$0xff] %vm1955_vm2, %v1903_v1  ;;  %v1906_v3 = vadd.f32 %v2511_v2, %v3150_v37 }
 0x34e   :  { %v1680_v5 = vpop.f32.mrf.mxu1 }
 0x34f   :  { %1971 = vst.msk [vmem:[%s3479_s7 + $0x78] sm:$0xff] %vm1955_vm2, %v1906_v3  ;;  %v1904_v6 = vadd.f32 %v3150_v37, %v1680_v5 }
 0x350   :  { %v2514_v25 = vpop.f32.mrf.mxu1 }
 0x351   :  { %1969 = vst.msk [vmem:[%s3479_s7 + $0x68] sm:$0xff] %vm1955_vm2, %v1904_v6  ;;  %v1909_v7 = vadd.f32 %v2514_v25, %v3150_v37 }
 0x352   :  { %v1693_v8 = vpop.f32.mrf.mxu1 }
 0x353   :  { %1974 = vst.msk [vmem:[%s3479_s7 + $0x90] sm:$0xff] %vm1955_vm2, %v1909_v7  ;;  %v1907_v9 = vadd.f32 %v3150_v37, %v1693_v8 }
 0x354   :  { %v2515_v10 = vpop.f32.mrf.mxu1 }
 0x355   :  { %1972 = vst.msk [vmem:[%s3479_s7 + $0x80] sm:$0xff] %vm1955_vm2, %v1907_v9  ;;  %v1910_v11 = vadd.f32 %v2515_v10, %v3150_v37 }
 0x356   :  { %v1696_v12 = vpop.f32.mrf.mxu1 }
 0x357   :  { %1975 = vst.msk [vmem:[%s3479_s7 + $0x98] sm:$0xff] %vm1955_vm2, %v1910_v11  ;;  %v1908_v13 = vadd.f32 %v3150_v37, %v1696_v12 }
 0x358   :  { %v2518_v14 = vpop.f32.mrf.mxu1 }
 0x359   :  { %1973 = vst.msk [vmem:[%s3479_s7 + $0x88] sm:$0xff] %vm1955_vm2, %v1908_v13  ;;  %v1913_v15 = vadd.f32 %v2518_v14, %v3150_v37 }
 0x35a   :  { %v1709_v16 = vpop.f32.mrf.mxu1 }
 0x35b   :  { %1978 = vst.msk [vmem:[%s3479_s7 + $0xb0] sm:$0xff] %vm1955_vm2, %v1913_v15  ;;  %v1911_v17 = vadd.f32 %v3150_v37, %v1709_v16 }
 0x35c   :  { %v2519_v18 = vpop.f32.mrf.mxu1 }
 0x35d   :  { %1976 = vst.msk [vmem:[%s3479_s7 + $0xa0] sm:$0xff] %vm1955_vm2, %v1911_v17  ;;  %v1914_v19 = vadd.f32 %v2519_v18, %v3150_v37 }
 0x35e   :  { %v1712_v20 = vpop.f32.mrf.mxu1 }
 0x35f   :  { %1979 = vst.msk [vmem:[%s3479_s7 + $0xb8] sm:$0xff] %vm1955_vm2, %v1914_v19  ;;  %v1912_v21 = vadd.f32 %v3150_v37, %v1712_v20 }
 0x360   :  { %v2522_v22 = vpop.f32.mrf.mxu1 }
 0x361   :  { %1977 = vst.msk [vmem:[%s3479_s7 + $0xa8] sm:$0xff] %vm1955_vm2, %v1912_v21  ;;  %v1917_v23 = vadd.f32 %v2522_v22, %v3150_v37 }
 0x362   :  { %v1725_v47 = vpop.f32.mrf.mxu1 }
 0x363   :  { %1982 = vst.msk [vmem:[%s3479_s7 + $0xd0] sm:$0xff] %vm1955_vm2, %v1917_v23  ;;  %v1915_v24 = vadd.f32 %v3150_v37, %v1725_v47 }
 0x364   :  { %v2523_v26 = vpop.f32.mrf.mxu1 }
 0x365   :  { %1980 = vst.msk [vmem:[%s3479_s7 + $0xc0] sm:$0xff] %vm1955_vm2, %v1915_v24  ;;  %v1918_v27 = vadd.f32 %v2523_v26, %v3150_v37 }
 0x366   :  { %v1728_v28 = vpop.f32.mrf.mxu1 }
 0x367   :  { %1983 = vst.msk [vmem:[%s3479_s7 + $0xd8] sm:$0xff] %vm1955_vm2, %v1918_v27  ;;  %v1916_v29 = vadd.f32 %v3150_v37, %v1728_v28 }
 0x368   :  { %v2526_v30 = vpop.f32.mrf.mxu1 }
 0x369   :  { %1981 = vst.msk [vmem:[%s3479_s7 + $0xc8] sm:$0xff] %vm1955_vm2, %v1916_v29  ;;  %v1921_v31 = vadd.f32 %v2526_v30, %v3150_v37 }
 0x36a   :  { %v1741_v32 = vpop.f32.mrf.mxu1 }
 0x36b   :  { %1986 = vst.msk [vmem:[%s3479_s7 + $0xf0] sm:$0xff] %vm1955_vm2, %v1921_v31  ;;  %v1919_v33 = vadd.f32 %v3150_v37, %v1741_v32 }
 0x36c   :  { %v2527_v34 = vpop.f32.mrf.mxu1 }
 0x36d   :  { %1984 = vst.msk [vmem:[%s3479_s7 + $0xe0] sm:$0xff] %vm1955_vm2, %v1919_v33  ;;  %v1922_v35 = vadd.f32 %v2527_v34, %v3150_v37 }
 0x36e   :  { %v1744_v36 = vpop.f32.mrf.mxu1 }
 0x36f   :  { %1987 = vst.msk [vmem:[%s3479_s7 + $0xf8] sm:$0xff] %vm1955_vm2, %v1922_v35  ;;  %v1920_v38 = vadd.f32 %v3150_v37, %v1744_v36 }
 0x370   :  { %v2530_v39 = vpop.f32.mrf.mxu1 }
 0x371   :  { %1985 = vst.msk [vmem:[%s3479_s7 + $0xe8] sm:$0xff] %vm1955_vm2, %v1920_v38  ;;  %v1925_v40 = vadd.f32 %v2530_v39, %v3150_v37 }
 0x372   :  { %v1757_v4 = vpop.f32.mrf.mxu1 }
 0x373   :  { %1990 = vst.msk [vmem:[%s3479_s7 + $0x110] sm:$0xff] %vm1955_vm2, %v1925_v40  ;;  %v1923_v41 = vadd.f32 %v3150_v37, %v1757_v4 }
 0x374   :  { %v2531_v42 = vpop.f32.mrf.mxu1 }
 0x375   :  { %1988 = vst.msk [vmem:[%s3479_s7 + $0x100] sm:$0xff] %vm1955_vm2, %v1923_v41  ;;  %v1926_v43 = vadd.f32 %v2531_v42, %v3150_v37 }
 0x376   :  { %v1760_v44 = vpop.f32.mrf.mxu1 }
 0x377   :  { %1991 = vst.msk [vmem:[%s3479_s7 + $0x118] sm:$0xff] %vm1955_vm2, %v1926_v43  ;;  %v1924_v45 = vadd.f32 %v3150_v37, %v1760_v44 }
 0x378   :  { %v2534_v46 = vpop.f32.mrf.mxu1 }
 0x379   :  { %1989 = vst.msk [vmem:[%s3479_s7 + $0x108] sm:$0xff] %vm1955_vm2, %v1924_v45  ;;  %v1929_v48 = vadd.f32 %v2534_v46, %v3150_v37 }
 0x37a   :  { %v1773_v49 = vpop.f32.mrf.mxu1 }
 0x37b   :  { %1994 = vst.msk [vmem:[%s3479_s7 + $0x130] sm:$0xff] %vm1955_vm2, %v1929_v48  ;;  %v1927_v50 = vadd.f32 %v3150_v37, %v1773_v49 }
 0x37c   :  { %v2535_v51 = vpop.f32.mrf.mxu1 }
 0x37d   :  { %1992 = vst.msk [vmem:[%s3479_s7 + $0x120] sm:$0xff] %vm1955_vm2, %v1927_v50  ;;  %v1930_v52 = vadd.f32 %v2535_v51, %v3150_v37 }
 0x37e   :  { %v1776_v53 = vpop.f32.mrf.mxu1 }
 0x37f   :  { %1995 = vst.msk [vmem:[%s3479_s7 + $0x138] sm:$0xff] %vm1955_vm2, %v1930_v52  ;;  %v1928_v54 = vadd.f32 %v3150_v37, %v1776_v53 }
 0x380   :  { %v2538_v55 = vpop.f32.mrf.mxu1 }
 0x381   :  { %1993 = vst.msk [vmem:[%s3479_s7 + $0x128] sm:$0xff] %vm1955_vm2, %v1928_v54  ;;  %v1933_v56 = vadd.f32 %v2538_v55, %v3150_v37 }
 0x382   :  { %v1789_v57 = vpop.f32.mrf.mxu1 }
 0x383   :  { %1998 = vst.msk [vmem:[%s3479_s7 + $0x150] sm:$0xff] %vm1955_vm2, %v1933_v56  ;;  %v1931_v58 = vadd.f32 %v3150_v37, %v1789_v57 }
 0x384   :  { %v2539_v59 = vpop.f32.mrf.mxu1 }
 0x385   :  { %1996 = vst.msk [vmem:[%s3479_s7 + $0x140] sm:$0xff] %vm1955_vm2, %v1931_v58  ;;  %v1934_v60 = vadd.f32 %v2539_v59, %v3150_v37 }
 0x386   :  { %v1792_v61 = vpop.f32.mrf.mxu1 }
 0x387   :  { %1999 = vst.msk [vmem:[%s3479_s7 + $0x158] sm:$0xff] %vm1955_vm2, %v1934_v60  ;;  %v1932_v62 = vadd.f32 %v3150_v37, %v1792_v61 }
 0x388   :  { %v2542_v63 = vpop.f32.mrf.mxu1 }
 0x389   :  { %1997 = vst.msk [vmem:[%s3479_s7 + $0x148] sm:$0xff] %vm1955_vm2, %v1932_v62  ;;  %v1937_v0 = vadd.f32 %v2542_v63, %v3150_v37 }
 0x38a   :  { %v1805_v1 = vpop.f32.mrf.mxu1 }
 0x38b   :  { %2002 = vst.msk [vmem:[%s3479_s7 + $0x170] sm:$0xff] %vm1955_vm2, %v1937_v0  ;;  %v1935_v2 = vadd.f32 %v3150_v37, %v1805_v1 }
 0x38c   :  { %v2543_v3 = vpop.f32.mrf.mxu1 }
 0x38d   :  { %2000 = vst.msk [vmem:[%s3479_s7 + $0x160] sm:$0xff] %vm1955_vm2, %v1935_v2  ;;  %v1938_v5 = vadd.f32 %v2543_v3, %v3150_v37 }
 0x38e   :  { %v1808_v6 = vpop.f32.mrf.mxu1 }
 0x38f   :  { %2003 = vst.msk [vmem:[%s3479_s7 + $0x178] sm:$0xff] %vm1955_vm2, %v1938_v5  ;;  %v1936_v25 = vadd.f32 %v3150_v37, %v1808_v6 }
 0x390   :  { %v2546_v7 = vpop.f32.mrf.mxu1 }
 0x391   :  { %2001 = vst.msk [vmem:[%s3479_s7 + $0x168] sm:$0xff] %vm1955_vm2, %v1936_v25  ;;  %v1941_v8 = vadd.f32 %v2546_v7, %v3150_v37 }
 0x392   :  { %v1821_v9 = vpop.f32.mrf.mxu1 }
 0x393   :  { %2006 = vst.msk [vmem:[%s3479_s7 + $0x190] sm:$0xff] %vm1955_vm2, %v1941_v8  ;;  %v1939_v10 = vadd.f32 %v3150_v37, %v1821_v9 }
 0x394   :  { %v2547_v11 = vpop.f32.mrf.mxu1 }
 0x395   :  { %2004 = vst.msk [vmem:[%s3479_s7 + $0x180] sm:$0xff] %vm1955_vm2, %v1939_v10  ;;  %v1942_v12 = vadd.f32 %v2547_v11, %v3150_v37 }
 0x396   :  { %v1824_v13 = vpop.f32.mrf.mxu1 }
 0x397   :  { %2007 = vst.msk [vmem:[%s3479_s7 + $0x198] sm:$0xff] %vm1955_vm2, %v1942_v12  ;;  %v1940_v14 = vadd.f32 %v3150_v37, %v1824_v13 }
 0x398   :  { %v2550_v15 = vpop.f32.mrf.mxu1 }
 0x399   :  { %2005 = vst.msk [vmem:[%s3479_s7 + $0x188] sm:$0xff] %vm1955_vm2, %v1940_v14  ;;  %v1945_v16 = vadd.f32 %v2550_v15, %v3150_v37 }
 0x39a   :  { %v1837_v17 = vpop.f32.mrf.mxu1 }
 0x39b   :  { %2010 = vst.msk [vmem:[%s3479_s7 + $0x1b0] sm:$0xff] %vm1955_vm2, %v1945_v16  ;;  %v1943_v18 = vadd.f32 %v3150_v37, %v1837_v17 }
 0x39c   :  { %v2551_v19 = vpop.f32.mrf.mxu1 }
 0x39d   :  { %2008 = vst.msk [vmem:[%s3479_s7 + $0x1a0] sm:$0xff] %vm1955_vm2, %v1943_v18  ;;  %v1946_v20 = vadd.f32 %v2551_v19, %v3150_v37 }
 0x39e   :  { %v1840_v21 = vpop.f32.mrf.mxu1 }
 0x39f   :  { %2011 = vst.msk [vmem:[%s3479_s7 + $0x1b8] sm:$0xff] %vm1955_vm2, %v1946_v20  ;;  %v1944_v22 = vadd.f32 %v3150_v37, %v1840_v21 }
 0x3a0   :  { %v2554_v23 = vpop.f32.mrf.mxu1 }
 0x3a1   :  { %2009 = vst.msk [vmem:[%s3479_s7 + $0x1a8] sm:$0xff] %vm1955_vm2, %v1944_v22  ;;  %v1949_v47 = vadd.f32 %v2554_v23, %v3150_v37 }
 0x3a2   :  { %v1853_v24 = vpop.f32.mrf.mxu1 }
 0x3a3   :  { %2014 = vst.msk [vmem:[%s3479_s7 + $0x1d0] sm:$0xff] %vm1955_vm2, %v1949_v47  ;;  %v1947_v26 = vadd.f32 %v3150_v37, %v1853_v24 }
 0x3a4   :  { %v2555_v27 = vpop.f32.mrf.mxu1 }
 0x3a5   :  { %2012 = vst.msk [vmem:[%s3479_s7 + $0x1c0] sm:$0xff] %vm1955_vm2, %v1947_v26  ;;  %v1950_v28 = vadd.f32 %v2555_v27, %v3150_v37 }
 0x3a6   :  { %v1856_v29 = vpop.f32.mrf.mxu1 }
 0x3a7   :  { %2015 = vst.msk [vmem:[%s3479_s7 + $0x1d8] sm:$0xff] %vm1955_vm2, %v1950_v28  ;;  %v1948_v30 = vadd.f32 %v3150_v37, %v1856_v29 }
 0x3a8   :  { %v2558_v31 = vpop.f32.mrf.mxu1 }
 0x3a9   :  { %2013 = vst.msk [vmem:[%s3479_s7 + $0x1c8] sm:$0xff] %vm1955_vm2, %v1948_v30  ;;  %v1953_v32 = vadd.f32 %v2558_v31, %v3150_v37 }
 0x3aa   :  { %v1869_v33 = vpop.f32.mrf.mxu1 }
 0x3ab   :  { %2018 = vst.msk [vmem:[%s3479_s7 + $0x1f0] sm:$0xff] %vm1955_vm2, %v1953_v32  ;;  %v1951_v34 = vadd.f32 %v3150_v37, %v1869_v33 }
 0x3ac   :  { %v2559_v35 = vpop.f32.mrf.mxu1 }
 0x3ad   :  { %2016 = vst.msk [vmem:[%s3479_s7 + $0x1e0] sm:$0xff] %vm1955_vm2, %v1951_v34  ;;  %v1954_v36 = vadd.f32 %v2559_v35, %v3150_v37 }
 0x3ae   :  { %v1872_v38 = vpop.f32.mrf.mxu1 }
 0x3af   :  { %2019 = vst.msk [vmem:[%s3479_s7 + $0x1f8] sm:$0xff] %vm1955_vm2, %v1954_v36  ;;  %v1952_v39 = vadd.f32 %v3150_v37, %v1872_v38 }
 0x3b1   :  { %2017 = vst.msk [vmem:[%s3479_s7 + $0x1e8] sm:$0xff] %vm1955_vm2, %v1952_v39 }

</bundles_post_ra>
